<compile_context>
chip_gen: v7x
topology: tpu7x:2x2x1
jax: 0.10.0
libtpu: 0.0.40
codegen_flags: <defaults>
</compile_context>

<pallas_src>
import jax
import jax.numpy as jnp
from jax.experimental import pallas as pl
from jax.experimental.pallas import tpu as pltpu


def _mlp_kernel(x_ref,
                w1_ref, b1_ref,
                w2_ref, b2_ref,
                w3_ref, b3_ref,
                w4_ref, b4_ref,
                o_ref):
    """Fused 4-layer MLP for one batch tile.

    Matmuls hit the MXU with f32 accumulation; bias-add/ReLU run on the VPU in
    f32; activations are cast back to the compute dtype (bf16 by default) between
    layers so every MXU pass sees narrow operands.  Everything stays in VMEM.
    """
    cdt = w1_ref.dtype  # compute dtype of the matmul operands (bf16 or f32)

    h = x_ref[...].astype(cdt)  # VPU cast; x stays in its HBM dtype outside
    h = jnp.dot(h, w1_ref[...], preferred_element_type=jnp.float32) + b1_ref[...]
    h = jnp.maximum(h, 0.0).astype(cdt)

    h = jnp.dot(h, w2_ref[...], preferred_element_type=jnp.float32) + b2_ref[...]
    h = jnp.maximum(h, 0.0).astype(cdt)

    h = jnp.dot(h, w3_ref[...], preferred_element_type=jnp.float32) + b3_ref[...]
    h = jnp.maximum(h, 0.0).astype(cdt)

    out = jnp.dot(h, w4_ref[...], preferred_element_type=jnp.float32) + b4_ref[...]
    o_ref[...] = out.astype(o_ref.dtype)


def _vmem_capacity_bytes():
    """Physical VMEM of the local chip (128 MiB v5e/v6e, 64 MiB/TC v7x)."""
    try:
        info = pltpu.get_tpu_info()
        for attr in ("vmem_capacity_bytes", "vmem_bytes", "vmem_size_bytes"):
            v = getattr(info, attr, None)
            if v:
                return int(v)
    except Exception:
        pass
    return 64 << 20  # conservative fallback (v7x per-TC size)


def _pick_tile_b(B, *, x_dtype, out_dtype):
    """MXU-shape-aware batch tile.

    Prefer 256-row tiles (fills the 256x256 MXU on v6e/v7x; on v5e a 256-row
    tile is two clean 128-row passes), fall back to the largest sublane-aligned
    divisor, else the full batch (block == full array dim is always legal).
    Sub-32-bit activation tiles need a 16-row multiple (bf16 sublane packing).
    """
    sub = 8
    if jnp.dtype(x_dtype).itemsize < 4 or jnp.dtype(out_dtype).itemsize < 4:
        sub = 16
    for cand in (256, 128, 64, 32, 16, 8):
        if cand % sub == 0 and B % cand == 0:
            return cand
    return B


def prepare_params(params, *, compute_dtype=jnp.bfloat16):
    """One-time preprocessing (do this at init, NOT per call).

    Casts weights to the MXU compute dtype (bf16 by default: 2-4x MXU rate and
    half the weight DMA bytes vs f32 emulation on v5e/v6e/v7x) and lane-pads the
    final projection to a multiple of 128 so the output store is an unmasked vst.
    Biases stay f32 (added to the f32 accumulator).
    """
    output_dim = params["w4"].shape[1]
    padded_out = max(128, ((output_dim + 127) // 128) * 128)
    w4, b4 = params["w4"], params["b4"]
    if padded_out != output_dim:
        w4 = jnp.pad(w4, ((0, 0), (0, padded_out - output_dim)))
        b4 = jnp.pad(b4, ((0, 0), (0, padded_out - output_dim)))
    compute_dtype = jnp.dtype(compute_dtype)
    return {
        "ws": tuple(w.astype(compute_dtype)
                    for w in (params["w1"], params["w2"], params["w3"], w4)),
        "bs": tuple(b.astype(jnp.float32)
                    for b in (params["b1"], params["b2"], params["b3"], b4)),
        "output_dim": output_dim,
        "padded_out": padded_out,
        "compute_dtype": compute_dtype,
    }


def feed_forward(x, prepared, *, tile_b=None, out_dtype=None, vmem_limit_bytes=None):
    """x: (B, input_dim) f32/bf16. prepared: output of prepare_params()."""
    B, input_dim = x.shape
    ws, bs = prepared["ws"], prepared["bs"]
    hidden_dim = ws[0].shape[1]
    output_dim = prepared["output_dim"]
    padded_out = prepared["padded_out"]
    assert ws[0].shape[0] == input_dim, "input_dim mismatch with prepared params"

    out_dtype = jnp.dtype(x.dtype if out_dtype is None else out_dtype)

    if tile_b is None:
        tile_b = _pick_tile_b(B, x_dtype=x.dtype, out_dtype=out_dtype)
    assert B % tile_b == 0, "batch must be divisible by tile_b"
    if tile_b != B and (jnp.dtype(x.dtype).itemsize < 4 or out_dtype.itemsize < 4):
        assert tile_b % 16 == 0, "sub-32-bit activation tiles need tile_b % 16 == 0"
    else:
        assert tile_b % 8 == 0 or tile_b == B, "tile_b must be a multiple of 8"
    grid_steps = B // tile_b

    # Megacore (v7x): "parallel" duplicates the resident weight DMA on each core,
    # so only split when per-call activation traffic is at least weight-sized.
    wbytes = sum(int(w.size) * w.dtype.itemsize for w in ws)
    bbytes = sum(int(b.size) * b.dtype.itemsize for b in bs)
    act_hbm = B * (input_dim * x.dtype.itemsize + padded_out * out_dtype.itemsize)
    use_parallel = grid_steps >= 2 and act_hbm >= wbytes
    dim_sem = ("parallel",) if use_parallel else ("arbitrary",)

    # Weights/biases never change block index across the grid: single-buffer
    # them (default double-buffering would just double their VMEM footprint).
    def const_spec(shape):
        return pl.BlockSpec(shape, lambda i: (0,) * len(shape),
                            pipeline_mode=pl.Buffered(1))

    in_specs = [pl.BlockSpec((tile_b, input_dim), lambda i: (i, 0))]
    for w, b in zip(ws, bs):
        in_specs.append(const_spec(w.shape))
        in_specs.append(const_spec(b.shape))
    out_spec = pl.BlockSpec((tile_b, padded_out), lambda i: (i, 0))

    # Generation-aware VMEM budget: physical capacity minus headroom for compiler
    # scratch/semaphores, with a floor of 32 MiB; request only what we need.
    cap = _vmem_capacity_bytes()
    usable = max(32 << 20, cap - (8 << 20))
    x_tile_bytes = 2 * tile_b * input_dim * x.dtype.itemsize          # double-buffered
    o_tile_bytes = 2 * tile_b * padded_out * out_dtype.itemsize       # double-buffered
    inter_bytes = 2 * tile_b * max(hidden_dim, padded_out) * 4        # live f32 pair
    need = wbytes + bbytes + x_tile_bytes + o_tile_bytes + inter_bytes
    if wbytes + bbytes > usable:
        # TODO(synk): add an N/K-tiled accumulator path (VMEM f32 scratch,
        # reduction axis last + "arbitrary", pl.when init/finalize, Buffered(2-3)
        # weight N-tiles) for models whose weights exceed VMEM (esp. v7x 64 MiB).
        raise NotImplementedError(
            "resident weights (%d bytes) exceed usable VMEM (%d bytes); "
            "N/K-tiled weight path not implemented" % (wbytes + bbytes, usable))
    if vmem_limit_bytes is None:
        vmem_limit_bytes = int(min(max(need + (4 << 20), 32 << 20), usable))

    flops = 2 * B * (input_dim * hidden_dim + 2 * hidden_dim * hidden_dim
                     + hidden_dim * padded_out)
    bytes_accessed = (int(x.size) * x.dtype.itemsize + wbytes + bbytes
                      + B * padded_out * out_dtype.itemsize)

    out = pl.pallas_call(
        _mlp_kernel,
        out_shape=jax.ShapeDtypeStruct((B, padded_out), out_dtype),
        grid_spec=pltpu.PrefetchScalarGridSpec(
            num_scalar_prefetch=0,
            grid=(grid_steps,),
            in_specs=in_specs,
            out_specs=out_spec,
        ),
        compiler_params=pltpu.CompilerParams(
            dimension_semantics=dim_sem,
            vmem_limit_bytes=vmem_limit_bytes),
        cost_estimate=pl.CostEstimate(flops=flops, transcendentals=0,
                                      bytes_accessed=bytes_accessed),
    )(x, ws[0], bs[0], ws[1], bs[1], ws[2], bs[2], ws[3], bs[3])

    return out[:, :output_dim] if padded_out != output_dim else out


def init_params(key, input_dim, hidden_dim, output_dim):
    """Deterministic init mirroring nn.Linear (weights stored transposed as (in, out))."""
    ks = jax.random.split(key, 8)
    dims = [(input_dim, hidden_dim),
            (hidden_dim, hidden_dim),
            (hidden_dim, hidden_dim),
            (hidden_dim, output_dim)]
    params = {}
    for idx, (din, dout) in enumerate(dims, start=1):
        bound = 1.0 / jnp.sqrt(din)
        w = jax.random.uniform(ks[2 * (idx - 1)], (din, dout),
                               minval=-bound, maxval=bound, dtype=jnp.float32)
        b = jax.random.uniform(ks[2 * (idx - 1) + 1], (1, dout),
                               minval=-bound, maxval=bound, dtype=jnp.float32)
        params[f"w{idx}"] = w
        params[f"b{idx}"] = b
    return params


def feed_forward_ref(x, params):
    hp = jax.lax.Precision.HIGHEST
    h = x
    for i in range(1, 4):
        h = jnp.maximum(jnp.dot(h, params[f"w{i}"], precision=hp) + params[f"b{i}"], 0.0)
    return jnp.dot(h, params["w4"], precision=hp) + params["b4"]


if __name__ == "__main__":
    key = jax.random.PRNGKey(0)
    k_x, k_p, k_x2, k_p2, k_x3 = jax.random.split(key, 5)

    # Config 1: lane-dense dims, single MXU-filling 256-row tile.
    B, D, H, O = 256, 128, 256, 128
    x = jax.random.normal(k_x, (B, D), dtype=jnp.float32)
    params = init_params(k_p, D, H, O)
    ref = feed_forward_ref(x, params)

    prepared_bf16 = prepare_params(params)                          # default bf16 fast path
    prepared_f32 = prepare_params(params, compute_dtype=jnp.float32)

    out_bf16 = jax.block_until_ready(feed_forward(x, prepared_bf16))
    assert out_bf16.shape == (B, O) and out_bf16.dtype == x.dtype
    assert jnp.allclose(out_bf16, ref, atol=1e-1, rtol=1e-1), "bf16 mismatch vs reference"

    out_f32 = jax.block_until_ready(feed_forward(x, prepared_f32))
    assert out_f32.shape == (B, O)
    assert jnp.allclose(out_f32, ref, atol=1e-3, rtol=1e-3), "f32 mismatch vs reference"

    # bf16 output writeback (halves out HBM bytes) -- loose tolerance.
    out_bf16_o = jax.block_until_ready(
        feed_forward(x, prepared_bf16, out_dtype=jnp.bfloat16))
    assert out_bf16_o.dtype == jnp.bfloat16 and out_bf16_o.shape == (B, O)
    assert jnp.allclose(out_bf16_o.astype(jnp.float32), ref, atol=2e-1, rtol=2e-1), \
        "bf16-output mismatch vs reference"

    # Config 2: multi-step batch grid (2 x 256-row tiles -> pipelined / megacore-splittable).
    x3 = jax.random.normal(k_x3, (512, D), dtype=jnp.float32)
    ref3 = feed_forward_ref(x3, params)
    out3 = jax.block_until_ready(feed_forward(x3, prepared_bf16))
    assert out3.shape == (512, O)
    assert jnp.allclose(out3, ref3, atol=1e-1, rtol=1e-1), "multi-step mismatch vs reference"

    # Config 3: tiny model with narrow output (exercises the lane-padding path).
    B2, D2, H2, O2 = 16, 16, 32, 8
    x2 = jax.random.normal(k_x2, (B2, D2), dtype=jnp.float32)
    params2 = init_params(k_p2, D2, H2, O2)
    prepared2 = prepare_params(params2, compute_dtype=jnp.float32)
    out2 = jax.block_until_ready(feed_forward(x2, prepared2))
    ref2 = feed_forward_ref(x2, params2)
    assert out2.shape == (B2, O2)
    assert jnp.allclose(out2, ref2, atol=1e-4, rtol=1e-4), "small-config mismatch"

    print("KERNEL_OK")
</pallas_src>

<mosaic_0001>
module attributes {stable_mosaic.version = 11 : i64} {
  func.func @_mlp_kernel(%arg0: i32, %arg1: memref<256x128xf32, #tpu.memory_space<vmem>>, %arg2: memref<128x256xbf16, #tpu.memory_space<vmem>>, %arg3: memref<1x256xf32, #tpu.memory_space<vmem>>, %arg4: memref<256x256xbf16, #tpu.memory_space<vmem>>, %arg5: memref<1x256xf32, #tpu.memory_space<vmem>>, %arg6: memref<256x256xbf16, #tpu.memory_space<vmem>>, %arg7: memref<1x256xf32, #tpu.memory_space<vmem>>, %arg8: memref<256x128xbf16, #tpu.memory_space<vmem>>, %arg9: memref<1x128xf32, #tpu.memory_space<vmem>>, %arg10: memref<256x128xf32, #tpu.memory_space<vmem>>) attributes {dimension_semantics = [#tpu.dimension_semantics<arbitrary>], iteration_bounds = array<i64: 1>, scalar_prefetch = 0 : i64, scratch_operands = 0 : i64, tpu.core_type = #tpu.core_type<tc>, window_params = [{transform_indices = @transform_0, window_bounds = array<i64: 256, 128>}, {pipeline_mode = #tpu.pipeline_mode<synchronous>, transform_indices = @transform_1, window_bounds = array<i64: 128, 256>}, {pipeline_mode = #tpu.pipeline_mode<synchronous>, transform_indices = @transform_2, window_bounds = array<i64: 1, 256>}, {pipeline_mode = #tpu.pipeline_mode<synchronous>, transform_indices = @transform_3, window_bounds = array<i64: 256, 256>}, {pipeline_mode = #tpu.pipeline_mode<synchronous>, transform_indices = @transform_4, window_bounds = array<i64: 1, 256>}, {pipeline_mode = #tpu.pipeline_mode<synchronous>, transform_indices = @transform_5, window_bounds = array<i64: 256, 256>}, {pipeline_mode = #tpu.pipeline_mode<synchronous>, transform_indices = @transform_6, window_bounds = array<i64: 1, 256>}, {pipeline_mode = #tpu.pipeline_mode<synchronous>, transform_indices = @transform_7, window_bounds = array<i64: 256, 128>}, {pipeline_mode = #tpu.pipeline_mode<synchronous>, transform_indices = @transform_8, window_bounds = array<i64: 1, 128>}, {transform_indices = @transform_9, window_bounds = array<i64: 256, 128>}]} {
    %c0 = arith.constant 0 : index
    %c0_0 = arith.constant 0 : index
    %0 = vector.load %arg1[%c0, %c0_0] : memref<256x128xf32, #tpu.memory_space<vmem>>, vector<256x128xf32>
    %1 = arith.truncf %0 : vector<256x128xf32> to vector<256x128xbf16>
    %c0_1 = arith.constant 0 : index
    %c0_2 = arith.constant 0 : index
    %2 = vector.load %arg2[%c0_1, %c0_2] : memref<128x256xbf16, #tpu.memory_space<vmem>>, vector<128x256xbf16>
    %cst = arith.constant dense<0.000000e+00> : vector<256x256xf32>
    %3 = tpu.matmul %1, %2, %cst {dimension_numbers = #tpu.dot_dimension_numbers<[1], [0], [0], [1], [0, 0, 1, 1], [], []>} : vector<256x128xbf16>, vector<128x256xbf16>, vector<256x256xf32> -> vector<256x256xf32>
    %c0_3 = arith.constant 0 : index
    %c0_4 = arith.constant 0 : index
    %4 = vector.load %arg3[%c0_3, %c0_4] : memref<1x256xf32, #tpu.memory_space<vmem>>, vector<1x256xf32>
    %5 = vector.broadcast %4 : vector<1x256xf32> to vector<256x256xf32>
    %6 = arith.addf %3, %5 : vector<256x256xf32>
    %cst_5 = arith.constant 0.000000e+00 : f32
    %7 = vector.broadcast %cst_5 : f32 to vector<256x256xf32>
    %8 = arith.maximumf %6, %7 : vector<256x256xf32>
    %9 = arith.truncf %8 : vector<256x256xf32> to vector<256x256xbf16>
    %c0_6 = arith.constant 0 : index
    %c0_7 = arith.constant 0 : index
    %10 = vector.load %arg4[%c0_6, %c0_7] : memref<256x256xbf16, #tpu.memory_space<vmem>>, vector<256x256xbf16>
    %cst_8 = arith.constant dense<0.000000e+00> : vector<256x256xf32>
    %11 = tpu.matmul %9, %10, %cst_8 {dimension_numbers = #tpu.dot_dimension_numbers<[1], [0], [0], [1], [0, 0, 1, 1], [], []>} : vector<256x256xbf16>, vector<256x256xbf16>, vector<256x256xf32> -> vector<256x256xf32>
    %c0_9 = arith.constant 0 : index
    %c0_10 = arith.constant 0 : index
    %12 = vector.load %arg5[%c0_9, %c0_10] : memref<1x256xf32, #tpu.memory_space<vmem>>, vector<1x256xf32>
    %13 = vector.broadcast %12 : vector<1x256xf32> to vector<256x256xf32>
    %14 = arith.addf %11, %13 : vector<256x256xf32>
    %cst_11 = arith.constant 0.000000e+00 : f32
    %15 = vector.broadcast %cst_11 : f32 to vector<256x256xf32>
    %16 = arith.maximumf %14, %15 : vector<256x256xf32>
    %17 = arith.truncf %16 : vector<256x256xf32> to vector<256x256xbf16>
    %c0_12 = arith.constant 0 : index
    %c0_13 = arith.constant 0 : index
    %18 = vector.load %arg6[%c0_12, %c0_13] : memref<256x256xbf16, #tpu.memory_space<vmem>>, vector<256x256xbf16>
    %cst_14 = arith.constant dense<0.000000e+00> : vector<256x256xf32>
    %19 = tpu.matmul %17, %18, %cst_14 {dimension_numbers = #tpu.dot_dimension_numbers<[1], [0], [0], [1], [0, 0, 1, 1], [], []>} : vector<256x256xbf16>, vector<256x256xbf16>, vector<256x256xf32> -> vector<256x256xf32>
    %c0_15 = arith.constant 0 : index
    %c0_16 = arith.constant 0 : index
    %20 = vector.load %arg7[%c0_15, %c0_16] : memref<1x256xf32, #tpu.memory_space<vmem>>, vector<1x256xf32>
    %21 = vector.broadcast %20 : vector<1x256xf32> to vector<256x256xf32>
    %22 = arith.addf %19, %21 : vector<256x256xf32>
    %cst_17 = arith.constant 0.000000e+00 : f32
    %23 = vector.broadcast %cst_17 : f32 to vector<256x256xf32>
    %24 = arith.maximumf %22, %23 : vector<256x256xf32>
    %25 = arith.truncf %24 : vector<256x256xf32> to vector<256x256xbf16>
    %c0_18 = arith.constant 0 : index
    %c0_19 = arith.constant 0 : index
    %26 = vector.load %arg8[%c0_18, %c0_19] : memref<256x128xbf16, #tpu.memory_space<vmem>>, vector<256x128xbf16>
    %cst_20 = arith.constant dense<0.000000e+00> : vector<256x128xf32>
    %27 = tpu.matmul %25, %26, %cst_20 {dimension_numbers = #tpu.dot_dimension_numbers<[1], [0], [0], [1], [0, 0, 1, 1], [], []>} : vector<256x256xbf16>, vector<256x128xbf16>, vector<256x128xf32> -> vector<256x128xf32>
    %c0_21 = arith.constant 0 : index
    %c0_22 = arith.constant 0 : index
    %28 = vector.load %arg9[%c0_21, %c0_22] : memref<1x128xf32, #tpu.memory_space<vmem>>, vector<1x128xf32>
    %29 = vector.broadcast %28 : vector<1x128xf32> to vector<256x128xf32>
    %30 = arith.addf %27, %29 : vector<256x128xf32>
    %c0_23 = arith.constant 0 : index
    %c0_24 = arith.constant 0 : index
    %31 = vector.load %arg10[%c0_23, %c0_24] : memref<256x128xf32, #tpu.memory_space<vmem>>, vector<256x128xf32>
    tpu.vector_store %arg10[%c0_23, %c0_24], %30 {strides = array<i32>} : memref<256x128xf32, #tpu.memory_space<vmem>>, vector<256x128xf32>,
    return
  }
  func.func @transform_0(%arg0: i32) -> (i32, i32) {
    %c0_i32 = arith.constant 0 : i32
    %c0_i32_0 = arith.constant 0 : i32
    return %arg0, %c0_i32 : i32, i32
  }
  func.func @transform_1(%arg0: i32) -> (i32, i32) {
    %c0_i32 = arith.constant 0 : i32
    %c0_i32_0 = arith.constant 0 : i32
    %c0_i32_1 = arith.constant 0 : i32
    return %c0_i32, %c0_i32_0 : i32, i32
  }
  func.func @transform_2(%arg0: i32) -> (i32, i32) {
    %c0_i32 = arith.constant 0 : i32
    %c0_i32_0 = arith.constant 0 : i32
    %c0_i32_1 = arith.constant 0 : i32
    return %c0_i32, %c0_i32_0 : i32, i32
  }
  func.func @transform_3(%arg0: i32) -> (i32, i32) {
    %c0_i32 = arith.constant 0 : i32
    %c0_i32_0 = arith.constant 0 : i32
    %c0_i32_1 = arith.constant 0 : i32
    return %c0_i32, %c0_i32_0 : i32, i32
  }
  func.func @transform_4(%arg0: i32) -> (i32, i32) {
    %c0_i32 = arith.constant 0 : i32
    %c0_i32_0 = arith.constant 0 : i32
    %c0_i32_1 = arith.constant 0 : i32
    return %c0_i32, %c0_i32_0 : i32, i32
  }
  func.func @transform_5(%arg0: i32) -> (i32, i32) {
    %c0_i32 = arith.constant 0 : i32
    %c0_i32_0 = arith.constant 0 : i32
    %c0_i32_1 = arith.constant 0 : i32
    return %c0_i32, %c0_i32_0 : i32, i32
  }
  func.func @transform_6(%arg0: i32) -> (i32, i32) {
    %c0_i32 = arith.constant 0 : i32
    %c0_i32_0 = arith.constant 0 : i32
    %c0_i32_1 = arith.constant 0 : i32
    return %c0_i32, %c0_i32_0 : i32, i32
  }
  func.func @transform_7(%arg0: i32) -> (i32, i32) {
    %c0_i32 = arith.constant 0 : i32
    %c0_i32_0 = arith.constant 0 : i32
    %c0_i32_1 = arith.constant 0 : i32
    return %c0_i32, %c0_i32_0 : i32, i32
  }
  func.func @transform_8(%arg0: i32) -> (i32, i32) {
    %c0_i32 = arith.constant 0 : i32
    %c0_i32_0 = arith.constant 0 : i32
    %c0_i32_1 = arith.constant 0 : i32
    return %c0_i32, %c0_i32_0 : i32, i32
  }
  func.func @transform_9(%arg0: i32) -> (i32, i32) {
    %c0_i32 = arith.constant 0 : i32
    %c0_i32_0 = arith.constant 0 : i32
    return %arg0, %c0_i32 : i32, i32
  }
}

</mosaic_0001>

<bundles_post_ra>
// kernel: tpu_custom_call.1
= control target key start
LH: loop header
LB: loop body
LE: loop exit
PB: predicated region body
PF: predicated region fallthrough
CT: control target
= control target key end

     0   :  { %14 = vsyncpa [#allocation3], 0  ;;  %s2830_s0 = inlined_call_operand.hbm [shape: f32[256,128], index: 0, kind: input, shape index: {}]   ;;  %s2831_s1 = inlined_call_operand.hbm [shape: bf16[128,256], index: 1, kind: input, shape index: {}]   ;;  %s2832_s2 = inlined_call_operand.vmem [shape: f32[1,256], index: 2, kind: input, shape index: {}]   ;;  %s2833_s3 = inlined_call_operand.hbm [shape: bf16[256,256], index: 3, kind: input, shape index: {}]   ;;  %s2834_s4 = inlined_call_operand.vmem [shape: f32[1,256], index: 4, kind: input, shape index: {}]   ;;  %s2835_s5 = inlined_call_operand.hbm [shape: bf16[256,256], index: 5, kind: input, shape index: {}]   ;;  %s2836_s6 = inlined_call_operand.vmem [shape: f32[1,256], index: 6, kind: input, shape index: {}]   ;;  %s2837_s7 = inlined_call_operand.hbm [shape: bf16[256,128], index: 7, kind: input, shape index: {}]   ;;  %s2838_s8 = inlined_call_operand.vmem [shape: f32[1,128], index: 8, kind: input, shape index: {}]   ;;  %s2839_s9 = inlined_call_operand.hbm [shape: f32[256,128], index: 9, kind: output, shape index: {}]  }
   0x1   :  { %15 = vsyncpa [#allocation6], 0 }
   0x2   :  { %16 = vsyncpa [#allocation9], 0 }
   0x3   :  { %17 = vsyncpa [#allocation4], 0  ;;  %s2392_s30 = smov [#allocation5]   ;;  %s2393_s11 = smov [#allocation8]  }
   0x4   :  { %s35_s10 = sshll.u32 %s2392_s30, 4  ;;  %s63_s12 = sshll.u32 %s2393_s11, 4  ;;  %s36_s10 = int_to_ptr.vmem [resolvable:$true] %s35_s10  ;;  %s2453_s12 = int_to_ptr.vmem [resolvable:$true] %s63_s12 }
   0x5   :  { %s2252_s15 = scalar_lea.hbm %s2831_s1, 2048 }
   0x6   :  { %p2253_p0 = scmp.ne.s32.totalorder %s2831_s1, %s2252_s15  ;;  %p2256_p1 = scmp.lt.u32.totalorder %s2252_s15, %s2831_s1 }
   0x8   :  { %p2258_p2 = pnand %p2256_p1, %p2253_p0 }
   0xa   :  { %2261 = shalt.err (!%p2258_p2)
}
   0xb   :  { %s2262_s20 = scalar_lea.vmem %s36_s10, 2048  ;;  %p2267_p4 = scmp.lt.s32.totalorder %s36_s10, %s36_s10 }
   0xc   :  { %p2263_p3 = scmp.ne.s32.totalorder %s36_s10, %s2262_s20  ;;  %p2268_p5 = scmp.lt.s32.totalorder %s2262_s20, %s2262_s20 }
   0xe   :  { %p2269_p6 = por %p2268_p5, %p2267_p4 }
  0x10   :  { %p2270_p7 = pnand %p2269_p6, %p2263_p3 }
  0x12   :  { %2273 = shalt.err (!%p2270_p7)
}
  0x13   :  { %s2394_s21 = smov 128   ;;  %s2395_s22 = smov 8  }
  0x14   :  { %41 = dma.hbm_to_vmem [thread:$0]  %s2831_s1, 2048, %s36_s10, [#allocation6], %s2394_s21, %s2394_s21, %s2395_s22  }
  0x15   :  { %s2274_s27 = scalar_lea.hbm %s2835_s5, 4096 }
  0x16   :  { %p2275_p8 = scmp.ne.s32.totalorder %s2835_s5, %s2274_s27  ;;  %p2278_p9 = scmp.lt.u32.totalorder %s2274_s27, %s2835_s5 }
  0x18   :  { %p2280_p10 = pnand %p2278_p9, %p2275_p8 }
  0x1a   :  { %2283 = shalt.err (!%p2280_p10)
}
  0x1b   :  { %s2284_s13 = scalar_lea.vmem %s2453_s12, 4096  ;;  %p2289_p12 = scmp.lt.s32.totalorder %s2453_s12, %s2453_s12 }
  0x1c   :  { %p2285_p11 = scmp.ne.s32.totalorder %s2453_s12, %s2284_s13  ;;  %p2290_p13 = scmp.lt.s32.totalorder %s2284_s13, %s2284_s13 }
  0x1e   :  { %p2291_p0 = por %p2290_p13, %p2289_p12 }
  0x20   :  { %p2292_p1 = pnand %p2291_p0, %p2285_p11 }
  0x22   :  { %2295 = shalt.err (!%p2292_p1)
}
  0x23   :  { %69 = dma.hbm_to_vmem [thread:$0]  %s2835_s5, 4096, %s2453_s12, [#allocation9], %s2394_s21, %s2394_s21, %s2395_s22  }
  0x24   :  { %s2396_s14 = smov [#allocation2]   ;;  %s2397_s16 = smov [#allocation7]  }
  0x25   :  { %s23_s15 = sshll.u32 %s2396_s14, 4  ;;  %s49_s17 = sshll.u32 %s2397_s16, 4  ;;  %s24_s15 = int_to_ptr.vmem [resolvable:$true] %s23_s15  ;;  %s2490_s17 = int_to_ptr.vmem [resolvable:$true] %s49_s17 }
  0x26   :  { %s2296_s20 = scalar_lea.hbm %s2830_s0, 4096 }
  0x27   :  { %p2297_p2 = scmp.ne.s32.totalorder %s2830_s0, %s2296_s20  ;;  %p2300_p3 = scmp.lt.u32.totalorder %s2296_s20, %s2830_s0 }
  0x29   :  { %p2302_p4 = pnand %p2300_p3, %p2297_p2 }
  0x2b   :  { %2305 = shalt.err (!%p2302_p4)
}
  0x2c   :  { %s2306_s5 = scalar_lea.vmem %s24_s15, 4096  ;;  %p2311_p6 = scmp.lt.s32.totalorder %s24_s15, %s24_s15 }
  0x2d   :  { %p2307_p5 = scmp.ne.s32.totalorder %s24_s15, %s2306_s5  ;;  %p2312_p7 = scmp.lt.s32.totalorder %s2306_s5, %s2306_s5 }
  0x2f   :  { %p2313_p8 = por %p2312_p7, %p2311_p6 }
  0x31   :  { %p2314_p9 = pnand %p2313_p8, %p2307_p5 }
  0x33   :  { %2317 = shalt.err (!%p2314_p9)
}
  0x34   :  { %29 = dma.hbm_to_vmem [thread:$0]  %s2830_s0, 4096, %s24_s15, [#allocation3], %s2394_s21, %s2394_s21, %s2395_s22  }
  0x35   :  { %s2318_s30 = scalar_lea.hbm %s2833_s3, 4096 }
  0x36   :  { %p2319_p10 = scmp.ne.s32.totalorder %s2833_s3, %s2318_s30  ;;  %p2322_p11 = scmp.lt.u32.totalorder %s2318_s30, %s2833_s3 }
  0x38   :  { %p2324_p12 = pnand %p2322_p11, %p2319_p10 }
  0x3a   :  { %2327 = shalt.err (!%p2324_p12)
}
  0x3b   :  { %s2328_s14 = scalar_lea.vmem %s2490_s17, 4096  ;;  %p2333_p0 = scmp.lt.s32.totalorder %s2490_s17, %s2490_s17 }
  0x3c   :  { %p2329_p13 = scmp.ne.s32.totalorder %s2490_s17, %s2328_s14  ;;  %p2334_p1 = scmp.lt.s32.totalorder %s2328_s14, %s2328_s14 }
  0x3e   :  { %p2335_p2 = por %p2334_p1, %p2333_p0 }
  0x40   :  { %p2336_p3 = pnand %p2335_p2, %p2329_p13 }
  0x42   :  { %2339 = shalt.err (!%p2336_p3)
}
  0x43   :  { %55 = dma.hbm_to_vmem [thread:$0]  %s2833_s3, 4096, %s2490_s17, [#allocation6], %s2394_s21, %s2394_s21, %s2395_s22  }
  0x44   :  { %s2398_s16 = smov [#allocation10]   ;;  %s2340_s23 = scalar_lea.hbm %s2837_s7, 2048 }
  0x45   :  { %s77_s18 = sshll.u32 %s2398_s16, 4  ;;  %p2341_p4 = scmp.ne.s32.totalorder %s2837_s7, %s2340_s23  ;;  %s78_s18 = int_to_ptr.vmem [resolvable:$true] %s77_s18 }
  0x46   :  { %p2344_p5 = scmp.lt.u32.totalorder %s2340_s23, %s2837_s7 }
  0x48   :  { %p2346_p6 = pnand %p2344_p5, %p2341_p4 }
  0x4a   :  { %2349 = shalt.err (!%p2346_p6)
}
  0x4b   :  { %s2350_s12 = scalar_lea.vmem %s78_s18, 2048  ;;  %p2355_p8 = scmp.lt.s32.totalorder %s78_s18, %s78_s18 }
  0x4c   :  { %p2351_p7 = scmp.ne.s32.totalorder %s78_s18, %s2350_s12  ;;  %p2356_p9 = scmp.lt.s32.totalorder %s2350_s12, %s2350_s12 }
  0x4e   :  { %p2357_p10 = por %p2356_p9, %p2355_p8 }
  0x50   :  { %p2358_p11 = pnand %p2357_p10, %p2351_p7 }
  0x52   :  { %2361 = shalt.err (!%p2358_p11)
}
  0x53   :  { %s2399_s3 = smov 64   ;;  %s2400_s17 = smov 4  }
  0x54   :  { %83 = dma.hbm_to_vmem [thread:$0]  %s2837_s7, 2048, %s78_s18, [#allocation9], %s2399_s3, %s2399_s3, %s2400_s17  }
  0x55   :  { %2384 = dma.done.wait [#allocation3], 4096  }
  0x56   :  { %2385 = vsyncadd [#allocation3], 4294963200 }
  0x57   :  { %2386 = dma.done.wait [#allocation6], 6144  }
  0x58   :  { %2387 = vsyncadd [#allocation6], 4294961152 }
  0x59   :  { %2388 = dma.done.wait [#allocation9], 6144  }
  0x5a   :  { %2389 = vsyncadd [#allocation9], 4294961152  ;;  %v2401_v0 = vmov 0   ;;  %v2116_v1 = vld [vmem:[#allocation5 + $0x4] ss:$8 sps:$4 sm:$0xff]   ;;  %v104_v27 = vld [vmem:[#allocation2 + $0x10] sm:$0xff] }
  0x5b   :  { %290 = vmatprep.mubr.bf16.mxu0 %v2401_v0  ;;  %v2118_v2 = vld [vmem:[#allocation5] ss:$8 sps:$4 sm:$0xff]   ;;  %258 = vmatprep.subr.bf16.mxu0 %v2116_v1  ;;  %v2119_v3 = vld [vmem:[#allocation5 + $0x14] ss:$8 sps:$4 sm:$0xff]   ;;  %v2121_v4 = vld [vmem:[#allocation5 + $0x10] ss:$8 sps:$4 sm:$0xff]  }
  0x5c   :  { %259 = vmatpush1.bf16.msra.mxu0 %v2118_v2  ;;  %v2122_v5 = vld [vmem:[#allocation5 + $0x24] ss:$8 sps:$4 sm:$0xff]   ;;  %v2124_v6 = vld [vmem:[#allocation5 + $0x20] ss:$8 sps:$4 sm:$0xff]   ;;  %v2125_v7 = vld [vmem:[#allocation5 + $0x34] ss:$8 sps:$4 sm:$0xff]  }
  0x5d   :  { %260 = vmatprep.subr.bf16.mxu0 %v2119_v3  ;;  %v2127_v8 = vld [vmem:[#allocation5 + $0x30] ss:$8 sps:$4 sm:$0xff]   ;;  %v2128_v9 = vld [vmem:[#allocation5 + $0x44] ss:$8 sps:$4 sm:$0xff]   ;;  %v2130_v10 = vld [vmem:[#allocation5 + $0x40] ss:$8 sps:$4 sm:$0xff]  }
  0x5e   :  { %v2131_v11 = vld [vmem:[#allocation5 + $0x54] ss:$8 sps:$4 sm:$0xff]   ;;  %v2133_v12 = vld [vmem:[#allocation5 + $0x50] ss:$8 sps:$4 sm:$0xff]   ;;  %v2134_v13 = vld [vmem:[#allocation5 + $0x64] ss:$8 sps:$4 sm:$0xff]  }
  0x5f   :  { %v2136_v14 = vld [vmem:[#allocation5 + $0x60] ss:$8 sps:$4 sm:$0xff]   ;;  %v2137_v15 = vld [vmem:[#allocation5 + $0x74] ss:$8 sps:$4 sm:$0xff]   ;;  %v2140_v16 = vld [vmem:[#allocation7 + $0x4] ss:$8 sps:$4 sm:$0xff]  }
  0x60   :  { %261 = vmatpush1.bf16.msra.mxu0 %v2121_v4  ;;  %v2142_v17 = vld [vmem:[#allocation7] ss:$8 sps:$4 sm:$0xff]   ;;  %v2143_v18 = vld [vmem:[#allocation7 + $0x14] ss:$8 sps:$4 sm:$0xff]   ;;  %v2139_v19 = vld [vmem:[#allocation5 + $0x70] ss:$8 sps:$4 sm:$0xff]   ;;  %751 = vmatprep.subr.bf16.mxu1 %v2140_v16 }
  0x61   :  { %262 = vmatprep.subr.bf16.mxu0 %v2122_v5  ;;  %v102_v20 = vld [vmem:[#allocation2] sm:$0xff]  ;;  %v103_v21 = vld [vmem:[#allocation2 + $0x8] sm:$0xff]  ;;  %752 = vmatpush1.bf16.msra.mxu1 %v2142_v17  ;;  %v2145_v22 = vld [vmem:[#allocation7 + $0x10] ss:$8 sps:$4 sm:$0xff]  }
  0x62   :  { %v134_v23 = vpack.c.bf16 %v103_v21, %v102_v20  ;;  %753 = vmatprep.subr.bf16.mxu1 %v2143_v18  ;;  %v2146_v24 = vld [vmem:[#allocation7 + $0x24] ss:$8 sps:$4 sm:$0xff]   ;;  %v2148_v25 = vld [vmem:[#allocation7 + $0x20] ss:$8 sps:$4 sm:$0xff]   ;;  %v2149_v26 = vld [vmem:[#allocation7 + $0x34] ss:$8 sps:$4 sm:$0xff]  }
  0x63   :  { %v105_v28 = vld [vmem:[#allocation2 + $0x18] sm:$0xff]  ;;  %v2152_v31 = vld [vmem:[#allocation7 + $0x44] ss:$8 sps:$4 sm:$0xff]   ;;  %v2154_v32 = vld [vmem:[#allocation7 + $0x40] ss:$8 sps:$4 sm:$0xff]  }
  0x64   :  { %263 = vmatpush1.bf16.msra.mxu0 %v2124_v6  ;;  %v2151_v29 = vld [vmem:[#allocation7 + $0x30] ss:$8 sps:$4 sm:$0xff]   ;;  %v135_v30 = vpack.c.bf16 %v105_v28, %v104_v27  ;;  %v2155_v33 = vld [vmem:[#allocation7 + $0x54] ss:$8 sps:$4 sm:$0xff]   ;;  %v106_v34 = vld [vmem:[#allocation2 + $0x20] sm:$0xff] }
  0x65   :  { %264 = vmatprep.subr.bf16.mxu0 %v2125_v7  ;;  %754 = vmatpush1.bf16.msra.mxu1 %v2145_v22  ;;  %v107_v35 = vld [vmem:[#allocation2 + $0x28] sm:$0xff]  ;;  %v2157_v36 = vld [vmem:[#allocation7 + $0x50] ss:$8 sps:$4 sm:$0xff]   ;;  %v2161_v40 = vld [vmem:[#allocation7 + $0x74] ss:$8 sps:$4 sm:$0xff]  }
  0x66   :  { %755 = vmatprep.subr.bf16.mxu1 %v2146_v24  ;;  %v2158_v37 = vld [vmem:[#allocation7 + $0x64] ss:$8 sps:$4 sm:$0xff]   ;;  %v136_v38 = vpack.c.bf16 %v107_v35, %v106_v34  ;;  %v2160_v39 = vld [vmem:[#allocation7 + $0x60] ss:$8 sps:$4 sm:$0xff]   ;;  %v108_v41 = vld [vmem:[#allocation2 + $0x30] sm:$0xff] }
  0x67   :  { %v109_v42 = vld [vmem:[#allocation2 + $0x38] sm:$0xff]  ;;  %v2164_v44 = vld [vmem:[#allocation7 + $0x84] ss:$8 sps:$4 sm:$0xff]   ;;  %v2166_v46 = vld [vmem:[#allocation7 + $0x80] ss:$8 sps:$4 sm:$0xff]  }
  0x68   :  { %265 = vmatpush1.bf16.msra.mxu0 %v2127_v8  ;;  %v2163_v43 = vld [vmem:[#allocation7 + $0x70] ss:$8 sps:$4 sm:$0xff]   ;;  %v137_v45 = vpack.c.bf16 %v109_v42, %v108_v41  ;;  %v2167_v47 = vld [vmem:[#allocation7 + $0x94] ss:$8 sps:$4 sm:$0xff]   ;;  %v110_v48 = vld [vmem:[#allocation2 + $0x40] sm:$0xff] }
  0x69   :  { %266 = vmatprep.subr.bf16.mxu0 %v2128_v9  ;;  %756 = vmatpush1.bf16.msra.mxu1 %v2148_v25  ;;  %v111_v49 = vld [vmem:[#allocation2 + $0x48] sm:$0xff]  ;;  %v2169_v50 = vld [vmem:[#allocation7 + $0x90] ss:$8 sps:$4 sm:$0xff]   ;;  %v2173_v54 = vld [vmem:[#allocation7 + $0xb4] ss:$8 sps:$4 sm:$0xff]  }
  0x6a   :  { %757 = vmatprep.subr.bf16.mxu1 %v2149_v26  ;;  %v138_v51 = vpack.c.bf16 %v111_v49, %v110_v48  ;;  %v2170_v52 = vld [vmem:[#allocation7 + $0xa4] ss:$8 sps:$4 sm:$0xff]   ;;  %v2172_v53 = vld [vmem:[#allocation7 + $0xa0] ss:$8 sps:$4 sm:$0xff]   ;;  %v112_v55 = vld [vmem:[#allocation2 + $0x50] sm:$0xff] }
  0x6b   :  { %v113_v56 = vld [vmem:[#allocation2 + $0x58] sm:$0xff]  ;;  %v2176_v59 = vld [vmem:[#allocation7 + $0xc4] ss:$8 sps:$4 sm:$0xff]   ;;  %v2178_v60 = vld [vmem:[#allocation7 + $0xc0] ss:$8 sps:$4 sm:$0xff]  }
  0x6c   :  { %267 = vmatpush1.bf16.msra.mxu0 %v2130_v10  ;;  %v2175_v57 = vld [vmem:[#allocation7 + $0xb0] ss:$8 sps:$4 sm:$0xff]   ;;  %v139_v58 = vpack.c.bf16 %v113_v56, %v112_v55  ;;  %v2179_v61 = vld [vmem:[#allocation7 + $0xd4] ss:$8 sps:$4 sm:$0xff]   ;;  %v114_v62 = vld [vmem:[#allocation2 + $0x60] sm:$0xff] }
  0x6d   :  { %268 = vmatprep.subr.bf16.mxu0 %v2131_v11  ;;  %758 = vmatpush1.bf16.msra.mxu1 %v2151_v29  ;;  %v115_v63 = vld [vmem:[#allocation2 + $0x68] sm:$0xff]  ;;  %v116_v2 = vld [vmem:[#allocation2 + $0x70] sm:$0xff]  ;;  %v117_v3 = vld [vmem:[#allocation2 + $0x78] sm:$0xff] }
  0x6e   :  { %759 = vmatprep.subr.bf16.mxu1 %v2152_v31  ;;  %v140_v1 = vpack.c.bf16 %v115_v63, %v114_v62  ;;  %v141_v4 = vpack.c.bf16 %v117_v3, %v116_v2  ;;  %v118_v5 = vld [vmem:[#allocation2 + $0x80] sm:$0xff]  ;;  %v119_v6 = vld [vmem:[#allocation2 + $0x88] sm:$0xff]  ;;  %v120_v8 = vld [vmem:[#allocation2 + $0x90] sm:$0xff] }
  0x6f   :  { %v142_v7 = vpack.c.bf16 %v119_v6, %v118_v5  ;;  %v121_v9 = vld [vmem:[#allocation2 + $0x98] sm:$0xff]  ;;  %v122_v11 = vld [vmem:[#allocation2 + $0xa0] sm:$0xff]  ;;  %v127_v22 = vld [vmem:[#allocation2 + $0xc8] sm:$0xff] }
  0x70   :  { %269 = vmatpush1.bf16.msra.mxu0 %v2133_v12  ;;  %v143_v10 = vpack.c.bf16 %v121_v9, %v120_v8  ;;  %v123_v12 = vld [vmem:[#allocation2 + $0xa8] sm:$0xff]  ;;  %v2181_v16 = vld [vmem:[#allocation7 + $0xd0] ss:$8 sps:$4 sm:$0xff]   ;;  %v2185_v20 = vld [vmem:[#allocation7 + $0xf4] ss:$8 sps:$4 sm:$0xff]  }
  0x71   :  { %270 = vmatprep.subr.bf16.mxu0 %v2134_v13  ;;  %760 = vmatpush1.bf16.msra.mxu1 %v2154_v32  ;;  %v144_v13 = vpack.c.bf16 %v123_v12, %v122_v11  ;;  %v2182_v18 = vld [vmem:[#allocation7 + $0xe4] ss:$8 sps:$4 sm:$0xff]   ;;  %v128_v25 = vld [vmem:[#allocation2 + $0xd0] sm:$0xff]  ;;  %v129_v26 = vld [vmem:[#allocation2 + $0xd8] sm:$0xff] }
  0x72   :  { %761 = vmatprep.subr.bf16.mxu1 %v2155_v33  ;;  %v126_v21 = vld [vmem:[#allocation2 + $0xc0] sm:$0xff]  ;;  %v147_v27 = vpack.c.bf16 %v129_v26, %v128_v25  ;;  %v131_v29 = vld [vmem:[#allocation2 + $0xe8] sm:$0xff]  ;;  %v132_v31 = vld [vmem:[#allocation2 + $0xf0] sm:$0xff] }
  0x73   :  { %v146_v24 = vpack.c.bf16 %v127_v22, %v126_v21  ;;  %v130_v28 = vld [vmem:[#allocation2 + $0xe0] sm:$0xff]  ;;  %v133_v32 = vld [vmem:[#allocation2 + $0xf8] sm:$0xff] }
  0x74   :  { %271 = vmatpush1.bf16.msra.mxu0 %v2136_v14  ;;  %v124_v14 = vld [vmem:[#allocation2 + $0xb0] sm:$0xff]  ;;  %v149_v33 = vpack.c.bf16 %v133_v32, %v132_v31  ;;  %v2188_v34 = vld [vmem:[#allocation8] ss:$8 sps:$4 sm:$0xff]   ;;  %v2190_v35 = vld [vmem:[#allocation8 + $0x4] ss:$8 sps:$4 sm:$0xff]  }
  0x75   :  { %272 = vmatprep.subr.bf16.mxu0 %v2137_v15  ;;  %762 = vmatpush1.bf16.msra.mxu1 %v2157_v36  ;;  %v125_v15 = vld [vmem:[#allocation2 + $0xb8] sm:$0xff]  ;;  %v168_v36 = vlaneseq  ;;  %v2194_v42 = vld [vmem:[#allocation8 + $0x20] ss:$8 sps:$4 sm:$0xff]   ;;  %v2202_v56 = vld [vmem:[#allocation8 + $0x44] ss:$8 sps:$4 sm:$0xff]  }
  0x76   :  { %763 = vmatprep.subr.bf16.mxu1 %v2158_v37  ;;  %v145_v17 = vpack.c.bf16 %v125_v15, %v124_v14  ;;  %v2191_v37 = vld [vmem:[#allocation8 + $0x10] ss:$8 sps:$4 sm:$0xff]   ;;  %v2199_v48 = vld [vmem:[#allocation8 + $0x34] ss:$8 sps:$4 sm:$0xff]   ;;  %v2200_v55 = vld [vmem:[#allocation8 + $0x40] ss:$8 sps:$4 sm:$0xff]  }
  0x77   :  { %v2206_v11 = vld [vmem:[#allocation8 + $0x60] ss:$8 sps:$4 sm:$0xff]   ;;  %v2214_v22 = vld [vmem:[#allocation8 + $0x84] ss:$8 sps:$4 sm:$0xff]   ;;  %v2217_v31 = vld [vmem:[#allocation8 + $0x94] ss:$8 sps:$4 sm:$0xff]  }
  0x78   :  { %273 = vmatpush1.bf16.msra.mxu0 %v2139_v19  ;;  %v2184_v19 = vld [vmem:[#allocation7 + $0xe0] ss:$8 sps:$4 sm:$0xff]  }
  0x79   :  { %764 = vmatpush1.bf16.msra.mxu1 %v2160_v39  ;;  %1244 = vmatprep.subr.bf16.mxu0 %v2190_v35  ;;  %v169_v39 = vshrl.u32 %v168_v36, 7 }
  0x7a   :  { %765 = vmatprep.subr.bf16.mxu1 %v2161_v40 }
  0x7b   :  { %291 = vmatmul.mubr.bf16.vlgmr.msra.gmra.mrb[0].mxu0 %v134_v23  ;;  %v2187_v23 = vld [vmem:[#allocation7 + $0xf0] ss:$8 sps:$4 sm:$0xff]   ;;  %v2555_v40 = vsub.s32 0, %v169_v39  ;;  %v2560_v41 = vsub.s32 1, %v169_v39 }
  0x7c   :  { %300 = vmatprep.mubr.bf16.mxu0 %v2401_v0  ;;  %1245 = vmatpush1.bf16.msra.mxu0 %v2188_v34 }
  0x7d   :  { %766 = vmatpush1.bf16.msra.mxu1 %v2163_v43  ;;  %v2196_v43 = vld [vmem:[#allocation8 + $0x24] ss:$8 sps:$4 sm:$0xff]  }
  0x7e   :  { %767 = vmatprep.subr.bf16.mxu1 %v2164_v44 }
  0x81   :  { %768 = vmatpush1.bf16.msra.mxu1 %v2166_v46 }
  0x82   :  { %769 = vmatprep.subr.bf16.mxu1 %v2167_v47  ;;  %v2197_v47 = vld [vmem:[#allocation8 + $0x30] ss:$8 sps:$4 sm:$0xff]  }
  0x83   :  { %301 = vmatmul.mubr.bf16.gmra.mrb[4].mxu0 %v135_v30  ;;  %v148_v30 = vpack.c.bf16 %v131_v29, %v130_v28  ;;  %v2212_v29 = vld [vmem:[#allocation8 + $0x80] ss:$8 sps:$4 sm:$0xff]  }
  0x84   :  { %310 = vmatprep.mubr.bf16.mxu0 %v2401_v0 }
  0x85   :  { %770 = vmatpush1.bf16.msra.mxu1 %v2169_v50 }
  0x86   :  { %771 = vmatprep.subr.bf16.mxu1 %v2170_v52 }
  0x89   :  { %772 = vmatpush1.bf16.msra.mxu1 %v2172_v53 }
  0x8a   :  { %773 = vmatprep.subr.bf16.mxu1 %v2173_v54 }
  0x8b   :  { %311 = vmatmul.mubr.bf16.gmra.mrb[8].mxu0 %v136_v38  ;;  %v2193_v38 = vld [vmem:[#allocation8 + $0x14] ss:$8 sps:$4 sm:$0xff]  }
  0x8c   :  { %320 = vmatprep.mubr.bf16.mxu0 %v2401_v0  ;;  %1246 = vmatprep.subr.bf16.mxu0 %v2193_v38 }
  0x8d   :  { %774 = vmatpush1.bf16.msra.mxu1 %v2175_v57  ;;  %1247 = vmatpush1.bf16.msra.mxu0 %v2191_v37  ;;  %v2215_v37 = vld [vmem:[#allocation8 + $0x90] ss:$8 sps:$4 sm:$0xff]  }
  0x8e   :  { %775 = vmatprep.subr.bf16.mxu1 %v2176_v59  ;;  %1248 = vmatprep.subr.bf16.mxu0 %v2196_v43 }
  0x91   :  { %776 = vmatpush1.bf16.msra.mxu1 %v2178_v60  ;;  %1249 = vmatpush1.bf16.msra.mxu0 %v2194_v42 }
  0x92   :  { %777 = vmatprep.subr.bf16.mxu1 %v2179_v61  ;;  %1250 = vmatprep.subr.bf16.mxu0 %v2199_v48 }
  0x93   :  { %321 = vmatmul.mubr.bf16.gmra.mrb[12].mxu0 %v137_v45 }
  0x94   :  { %330 = vmatprep.mubr.bf16.mxu0 %v2401_v0 }
  0x95   :  { %778 = vmatpush1.bf16.msra.mxu1 %v2181_v16  ;;  %1251 = vmatpush1.bf16.msra.mxu0 %v2197_v47 }
  0x96   :  { %779 = vmatprep.subr.bf16.mxu1 %v2182_v18  ;;  %1252 = vmatprep.subr.bf16.mxu0 %v2202_v56 }
  0x99   :  { %780 = vmatpush1.bf16.msra.mxu1 %v2184_v19  ;;  %1253 = vmatpush1.bf16.msra.mxu0 %v2200_v55  ;;  %v2209_v19 = vld [vmem:[#allocation8 + $0x70] ss:$8 sps:$4 sm:$0xff]  }
  0x9a   :  { %781 = vmatprep.subr.bf16.mxu1 %v2185_v20 }
  0x9b   :  { %331 = vmatmul.mubr.bf16.gmra.mrb[16].mxu0 %v138_v51 }
  0x9c   :  { %340 = vmatprep.mubr.bf16.mxu0 %v2401_v0 }
  0x9d   :  { %782 = vmatpush1.bf16.msra.mxu1 %v2187_v23 }
  0xa3   :  { %341 = vmatmul.mubr.bf16.gmra.mrb[20].mxu0 %v139_v58  ;;  %v2205_v58 = vld [vmem:[#allocation8 + $0x54] ss:$8 sps:$4 sm:$0xff]  }
  0xa4   :  { %350 = vmatprep.mubr.bf16.mxu0 %v2401_v0  ;;  %1254 = vmatprep.subr.bf16.mxu0 %v2205_v58  ;;  %v2221_v58 = vld [vmem:[#allocation8 + $0xb0] ss:$8 sps:$4 sm:$0xff]  }
  0xab   :  { %351 = vmatmul.mubr.bf16.gmra.mrb[24].mxu0 %v140_v1  ;;  %v2203_v1 = vld [vmem:[#allocation8 + $0x50] ss:$8 sps:$4 sm:$0xff]  }
  0xac   :  { %360 = vmatprep.mubr.bf16.mxu0 %v2401_v0  ;;  %1255 = vmatpush1.bf16.msra.mxu0 %v2203_v1 }
  0xb3   :  { %361 = vmatmul.mubr.bf16.gmra.mrb[28].mxu0 %v141_v4  ;;  %v2208_v4 = vld [vmem:[#allocation8 + $0x64] ss:$8 sps:$4 sm:$0xff]  }
  0xb4   :  { %370 = vmatprep.mubr.bf16.mxu0 %v2401_v0  ;;  %1256 = vmatprep.subr.bf16.mxu0 %v2208_v4 }
  0xb5   :  { %1257 = vmatpush1.bf16.msra.mxu0 %v2206_v11 }
  0xbb   :  { %371 = vmatmul.mubr.bf16.gmra.mrb[32].mxu0 %v142_v7 }
  0xbc   :  { %380 = vmatprep.mubr.bf16.mxu0 %v2401_v0 }
  0xc3   :  { %381 = vmatmul.mubr.bf16.gmra.mrb[36].mxu0 %v143_v10 }
  0xc4   :  { %390 = vmatprep.mubr.bf16.mxu0 %v2401_v0 }
  0xcb   :  { %391 = vmatmul.mubr.bf16.gmra.mrb[40].mxu0 %v144_v13  ;;  %v2211_v13 = vld [vmem:[#allocation8 + $0x74] ss:$8 sps:$4 sm:$0xff]  }
  0xcc   :  { %400 = vmatprep.mubr.bf16.mxu0 %v2401_v0  ;;  %1258 = vmatprep.subr.bf16.mxu0 %v2211_v13  ;;  %v2227_v13 = vld [vmem:[#allocation8 + $0xd0] ss:$8 sps:$4 sm:$0xff]  }
  0xcd   :  { %1259 = vmatpush1.bf16.msra.mxu0 %v2209_v19 }
  0xce   :  { %1260 = vmatprep.subr.bf16.mxu0 %v2214_v22 }
  0xd1   :  { %1261 = vmatpush1.bf16.msra.mxu0 %v2212_v29 }
  0xd2   :  { %1262 = vmatprep.subr.bf16.mxu0 %v2217_v31 }
  0xd3   :  { %401 = vmatmul.mubr.bf16.gmra.mrb[44].mxu0 %v145_v17 }
  0xd4   :  { %410 = vmatprep.mubr.bf16.mxu0 %v2401_v0 }
  0xd5   :  { %1263 = vmatpush1.bf16.msra.mxu0 %v2215_v37 }
  0xdb   :  { %411 = vmatmul.mubr.bf16.gmra.mrb[48].mxu0 %v146_v24 }
  0xdc   :  { %420 = vmatprep.mubr.bf16.mxu0 %v2401_v0 }
  0xe3   :  { %421 = vmatmul.mubr.bf16.gmra.mrb[52].mxu0 %v147_v27 }
  0xe4   :  { %430 = vmatprep.mubr.bf16.mxu0 %v2401_v0 }
  0xeb   :  { %431 = vmatmul.mubr.bf16.gmra.mrb[56].mxu0 %v148_v30 }
  0xec   :  { %440 = vmatprep.mubr.bf16.mxu0 %v2401_v0  ;;  %v166_v0 = vld [vmem:[%s2832_s2] sm:$0x3] }
  0xed   :  { %v2563_v44 = vrot.slane %v166_v0, %v2555_v40  ;;  %v2566_v45 = vrot.slane %v166_v0, %v2560_v41  ;;  %v2220_v0 = vld [vmem:[#allocation8 + $0xa4] ss:$8 sps:$4 sm:$0xff]  }
  0xee   :  { %1264 = vmatprep.subr.bf16.mxu0 %v2220_v0 }
  0xf3   :  { %441 = vmatmul.mubr.bf16.gmra.mrb[60].mxu0 %v149_v33 }
 0x14e   :  { %v292_v46 = vpop.f32.mrb[0].mxu0 }
 0x14f   :  { %v293_v49 = vadd.f32 %v292_v46, %v2563_v44  ;;  %v294_v50 = vpop.f32.mrb[1].mxu0 }
 0x150   :  { %v295_v51 = vadd.f32 %v294_v50, %v2566_v45  ;;  %v296_v52 = vpop.f32.mrb[2].mxu0  ;;  %v2218_v50 = vld [vmem:[#allocation8 + $0xa0] ss:$8 sps:$4 sm:$0xff]  }
 0x151   :  { %v297_v53 = vadd.f32 %v296_v52, %v2563_v44  ;;  %v298_v54 = vpop.f32.mrb[3].mxu0  ;;  %v451_v59 = vmax.f32 %v293_v49, 0.0  ;;  %v2223_v52 = vld [vmem:[#allocation8 + $0xb4] ss:$8 sps:$4 sm:$0xff]   ;;  %1265 = vmatpush1.bf16.msra.mxu0 %v2218_v50 }
 0x152   :  { %v299_v57 = vadd.f32 %v298_v54, %v2566_v45  ;;  %v452_v61 = vmax.f32 %v295_v51, 0.0  ;;  %1266 = vmatprep.subr.bf16.mxu0 %v2223_v52 }
 0x153   :  { %v453_v60 = vmax.f32 %v297_v53, 0.0 }
 0x154   :  { %v454_v62 = vmax.f32 %v299_v57, 0.0 }
 0x155   :  { %v515_v63 = vpack.c.bf16 %v453_v60, %v451_v59  ;;  %1267 = vmatpush1.bf16.msra.mxu0 %v2221_v58 }
 0x156   :  { %v302_v2 = vpop.f32.mrb[4].mxu0  ;;  %v516_v3 = vpack.c.bf16 %v454_v62, %v452_v61  ;;  %v2226_v61 = vld [vmem:[#allocation8 + $0xc4] ss:$8 sps:$4 sm:$0xff]  }
 0x157   :  { %v303_v5 = vadd.f32 %v302_v2, %v2563_v44  ;;  %v304_v6 = vpop.f32.mrb[5].mxu0  ;;  %1268 = vmatprep.subr.bf16.mxu0 %v2226_v61 }
 0x158   :  { %v305_v7 = vadd.f32 %v304_v6, %v2566_v45  ;;  %v306_v8 = vpop.f32.mrb[6].mxu0  ;;  %783 = vmatprep.mubr.bf16.mxu1 %v516_v3 }
 0x159   :  { %v307_v9 = vadd.f32 %v306_v8, %v2563_v44  ;;  %v308_v10 = vpop.f32.mrb[7].mxu0  ;;  %784 = vmatmul.mubr.bf16.vlgmr.msra.gmra.mrb[0].mxu1 %v515_v63  ;;  %v455_v14 = vmax.f32 %v303_v5, 0.0  ;;  %v2224_v5 = vld [vmem:[#allocation8 + $0xc0] ss:$8 sps:$4 sm:$0xff]  }
 0x15a   :  { %v309_v12 = vadd.f32 %v308_v10, %v2566_v45  ;;  %v456_v16 = vmax.f32 %v305_v7, 0.0  ;;  %v2229_v7 = vld [vmem:[#allocation8 + $0xd4] ss:$8 sps:$4 sm:$0xff]   ;;  %1269 = vmatpush1.bf16.msra.mxu0 %v2224_v5 }
 0x15b   :  { %v457_v15 = vmax.f32 %v307_v9, 0.0  ;;  %1270 = vmatprep.subr.bf16.mxu0 %v2229_v7 }
 0x15c   :  { %v458_v17 = vmax.f32 %v309_v12, 0.0 }
 0x15d   :  { %v517_v18 = vpack.c.bf16 %v457_v15, %v455_v14 }
 0x15e   :  { %v518_v20 = vpack.c.bf16 %v458_v17, %v456_v16  ;;  %v312_v21 = vpop.f32.mrb[8].mxu0  ;;  %v2232_v16 = vld [vmem:[#allocation8 + $0xe4] ss:$8 sps:$4 sm:$0xff]   ;;  %1271 = vmatpush1.bf16.msra.mxu0 %v2227_v13 }
 0x15f   :  { %v313_v23 = vadd.f32 %v312_v21, %v2563_v44  ;;  %v314_v24 = vpop.f32.mrb[9].mxu0  ;;  %1272 = vmatprep.subr.bf16.mxu0 %v2232_v16 }
 0x160   :  { %v315_v25 = vadd.f32 %v314_v24, %v2566_v45  ;;  %v316_v26 = vpop.f32.mrb[10].mxu0  ;;  %793 = vmatprep.mubr.bf16.mxu1 %v518_v20 }
 0x161   :  { %v317_v27 = vadd.f32 %v316_v26, %v2563_v44  ;;  %v318_v28 = vpop.f32.mrb[11].mxu0  ;;  %794 = vmatmul.mubr.bf16.gmra.mrb[4].mxu1 %v517_v18  ;;  %v459_v32 = vmax.f32 %v313_v23, 0.0  ;;  %v2230_v23 = vld [vmem:[#allocation8 + $0xe0] ss:$8 sps:$4 sm:$0xff]  }
 0x162   :  { %v319_v30 = vadd.f32 %v318_v28, %v2566_v45  ;;  %v460_v34 = vmax.f32 %v315_v25, 0.0  ;;  %1273 = vmatpush1.bf16.msra.mxu0 %v2230_v23 }
 0x163   :  { %v461_v33 = vmax.f32 %v317_v27, 0.0 }
 0x164   :  { %v462_v35 = vmax.f32 %v319_v30, 0.0 }
 0x165   :  { %v519_v36 = vpack.c.bf16 %v461_v33, %v459_v32 }
 0x166   :  { %v520_v38 = vpack.c.bf16 %v462_v35, %v460_v34  ;;  %v322_v39 = vpop.f32.mrb[12].mxu0 }
 0x167   :  { %v323_v42 = vadd.f32 %v322_v39, %v2563_v44  ;;  %v324_v43 = vpop.f32.mrb[13].mxu0 }
 0x168   :  { %v325_v46 = vadd.f32 %v324_v43, %v2566_v45  ;;  %v326_v47 = vpop.f32.mrb[14].mxu0  ;;  %803 = vmatprep.mubr.bf16.mxu1 %v520_v38 }
 0x169   :  { %v327_v48 = vadd.f32 %v326_v47, %v2563_v44  ;;  %v328_v49 = vpop.f32.mrb[15].mxu0  ;;  %804 = vmatmul.mubr.bf16.gmra.mrb[8].mxu1 %v519_v36  ;;  %v463_v53 = vmax.f32 %v323_v42, 0.0 }
 0x16a   :  { %v329_v51 = vadd.f32 %v328_v49, %v2566_v45  ;;  %v464_v55 = vmax.f32 %v325_v46, 0.0 }
 0x16b   :  { %v465_v54 = vmax.f32 %v327_v48, 0.0 }
 0x16c   :  { %v466_v56 = vmax.f32 %v329_v51, 0.0 }
 0x16d   :  { %v521_v57 = vpack.c.bf16 %v465_v54, %v463_v53 }
 0x16e   :  { %v522_v59 = vpack.c.bf16 %v466_v56, %v464_v55  ;;  %v332_v60 = vpop.f32.mrb[16].mxu0 }
 0x16f   :  { %v333_v62 = vadd.f32 %v332_v60, %v2563_v44  ;;  %v334_v63 = vpop.f32.mrb[17].mxu0 }
 0x170   :  { %v335_v1 = vadd.f32 %v334_v63, %v2566_v45  ;;  %v336_v2 = vpop.f32.mrb[18].mxu0  ;;  %813 = vmatprep.mubr.bf16.mxu1 %v522_v59 }
 0x171   :  { %v337_v3 = vadd.f32 %v336_v2, %v2563_v44  ;;  %v338_v4 = vpop.f32.mrb[19].mxu0  ;;  %814 = vmatmul.mubr.bf16.gmra.mrb[12].mxu1 %v521_v57  ;;  %v467_v8 = vmax.f32 %v333_v62, 0.0 }
 0x172   :  { %v339_v6 = vadd.f32 %v338_v4, %v2566_v45  ;;  %v468_v10 = vmax.f32 %v335_v1, 0.0 }
 0x173   :  { %v469_v9 = vmax.f32 %v337_v3, 0.0 }
 0x174   :  { %v470_v11 = vmax.f32 %v339_v6, 0.0 }
 0x175   :  { %v523_v12 = vpack.c.bf16 %v469_v9, %v467_v8 }
 0x176   :  { %v524_v14 = vpack.c.bf16 %v470_v11, %v468_v10  ;;  %v342_v15 = vpop.f32.mrb[20].mxu0 }
 0x177   :  { %v343_v17 = vadd.f32 %v342_v15, %v2563_v44  ;;  %v344_v18 = vpop.f32.mrb[21].mxu0 }
 0x178   :  { %v345_v19 = vadd.f32 %v344_v18, %v2566_v45  ;;  %v346_v20 = vpop.f32.mrb[22].mxu0  ;;  %823 = vmatprep.mubr.bf16.mxu1 %v524_v14 }
 0x179   :  { %v347_v21 = vadd.f32 %v346_v20, %v2563_v44  ;;  %v348_v22 = vpop.f32.mrb[23].mxu0  ;;  %824 = vmatmul.mubr.bf16.gmra.mrb[16].mxu1 %v523_v12  ;;  %v471_v25 = vmax.f32 %v343_v17, 0.0 }
 0x17a   :  { %v349_v24 = vadd.f32 %v348_v22, %v2566_v45  ;;  %v472_v27 = vmax.f32 %v345_v19, 0.0 }
 0x17b   :  { %v473_v26 = vmax.f32 %v347_v21, 0.0 }
 0x17c   :  { %v474_v28 = vmax.f32 %v349_v24, 0.0 }
 0x17d   :  { %v525_v29 = vpack.c.bf16 %v473_v26, %v471_v25 }
 0x17e   :  { %v526_v30 = vpack.c.bf16 %v474_v28, %v472_v27  ;;  %v352_v31 = vpop.f32.mrb[24].mxu0 }
 0x17f   :  { %v353_v32 = vadd.f32 %v352_v31, %v2563_v44  ;;  %v354_v33 = vpop.f32.mrb[25].mxu0 }
 0x180   :  { %v355_v34 = vadd.f32 %v354_v33, %v2566_v45  ;;  %v356_v35 = vpop.f32.mrb[26].mxu0  ;;  %833 = vmatprep.mubr.bf16.mxu1 %v526_v30 }
 0x181   :  { %v357_v36 = vadd.f32 %v356_v35, %v2563_v44  ;;  %v358_v37 = vpop.f32.mrb[27].mxu0  ;;  %834 = vmatmul.mubr.bf16.gmra.mrb[20].mxu1 %v525_v29  ;;  %v475_v39 = vmax.f32 %v353_v32, 0.0 }
 0x182   :  { %v359_v38 = vadd.f32 %v358_v37, %v2566_v45  ;;  %v476_v42 = vmax.f32 %v355_v34, 0.0 }
 0x183   :  { %v477_v0 = vmax.f32 %v357_v36, 0.0 }
 0x184   :  { %v478_v43 = vmax.f32 %v359_v38, 0.0 }
 0x185   :  { %v527_v46 = vpack.c.bf16 %v477_v0, %v475_v39 }
 0x186   :  { %v528_v47 = vpack.c.bf16 %v478_v43, %v476_v42  ;;  %v362_v48 = vpop.f32.mrb[28].mxu0 }
 0x187   :  { %v363_v49 = vadd.f32 %v362_v48, %v2563_v44  ;;  %v364_v50 = vpop.f32.mrb[29].mxu0 }
 0x188   :  { %v365_v51 = vadd.f32 %v364_v50, %v2566_v45  ;;  %v366_v52 = vpop.f32.mrb[30].mxu0  ;;  %843 = vmatprep.mubr.bf16.mxu1 %v528_v47 }
 0x189   :  { %v367_v53 = vadd.f32 %v366_v52, %v2563_v44  ;;  %v368_v54 = vpop.f32.mrb[31].mxu0  ;;  %844 = vmatmul.mubr.bf16.gmra.mrb[24].mxu1 %v527_v46  ;;  %v479_v56 = vmax.f32 %v363_v49, 0.0 }
 0x18a   :  { %v369_v55 = vadd.f32 %v368_v54, %v2566_v45  ;;  %v480_v58 = vmax.f32 %v365_v51, 0.0 }
 0x18b   :  { %v481_v57 = vmax.f32 %v367_v53, 0.0 }
 0x18c   :  { %v482_v59 = vmax.f32 %v369_v55, 0.0 }
 0x18d   :  { %v529_v60 = vpack.c.bf16 %v481_v57, %v479_v56 }
 0x18e   :  { %v530_v61 = vpack.c.bf16 %v482_v59, %v480_v58  ;;  %v372_v62 = vpop.f32.mrb[32].mxu0 }
 0x18f   :  { %v373_v63 = vadd.f32 %v372_v62, %v2563_v44  ;;  %v374_v1 = vpop.f32.mrb[33].mxu0 }
 0x190   :  { %v375_v2 = vadd.f32 %v374_v1, %v2566_v45  ;;  %v376_v3 = vpop.f32.mrb[34].mxu0  ;;  %853 = vmatprep.mubr.bf16.mxu1 %v530_v61 }
 0x191   :  { %v377_v4 = vadd.f32 %v376_v3, %v2563_v44  ;;  %v378_v5 = vpop.f32.mrb[35].mxu0  ;;  %854 = vmatmul.mubr.bf16.gmra.mrb[28].mxu1 %v529_v60  ;;  %v483_v7 = vmax.f32 %v373_v63, 0.0 }
 0x192   :  { %v379_v6 = vadd.f32 %v378_v5, %v2566_v45  ;;  %v484_v9 = vmax.f32 %v375_v2, 0.0  ;;  %v2235_v2 = vld [vmem:[#allocation8 + $0xf4] ss:$8 sps:$4 sm:$0xff]  }
 0x193   :  { %v485_v8 = vmax.f32 %v377_v4, 0.0  ;;  %v2233_v4 = vld [vmem:[#allocation8 + $0xf0] ss:$8 sps:$4 sm:$0xff]   ;;  %1274 = vmatprep.subr.bf16.mxu0 %v2235_v2 }
 0x194   :  { %v486_v10 = vmax.f32 %v379_v6, 0.0  ;;  %1275 = vmatpush1.bf16.msra.mxu0 %v2233_v4 }
 0x195   :  { %v531_v11 = vpack.c.bf16 %v485_v8, %v483_v7 }
 0x196   :  { %v532_v12 = vpack.c.bf16 %v486_v10, %v484_v9  ;;  %v382_v13 = vpop.f32.mrb[36].mxu0 }
 0x197   :  { %v383_v14 = vadd.f32 %v382_v13, %v2563_v44  ;;  %v384_v15 = vpop.f32.mrb[37].mxu0 }
 0x198   :  { %v385_v16 = vadd.f32 %v384_v15, %v2566_v45  ;;  %v386_v17 = vpop.f32.mrb[38].mxu0  ;;  %863 = vmatprep.mubr.bf16.mxu1 %v532_v12 }
 0x199   :  { %v387_v18 = vadd.f32 %v386_v17, %v2563_v44  ;;  %v388_v19 = vpop.f32.mrb[39].mxu0  ;;  %864 = vmatmul.mubr.bf16.gmra.mrb[32].mxu1 %v531_v11  ;;  %v487_v21 = vmax.f32 %v383_v14, 0.0 }
 0x19a   :  { %v389_v20 = vadd.f32 %v388_v19, %v2566_v45  ;;  %v488_v23 = vmax.f32 %v385_v16, 0.0 }
 0x19b   :  { %v489_v22 = vmax.f32 %v387_v18, 0.0 }
 0x19c   :  { %v490_v24 = vmax.f32 %v389_v20, 0.0 }
 0x19d   :  { %v533_v25 = vpack.c.bf16 %v489_v22, %v487_v21 }
 0x19e   :  { %v534_v26 = vpack.c.bf16 %v490_v24, %v488_v23  ;;  %v392_v27 = vpop.f32.mrb[40].mxu0 }
 0x19f   :  { %v393_v28 = vadd.f32 %v392_v27, %v2563_v44  ;;  %v394_v29 = vpop.f32.mrb[41].mxu0 }
 0x1a0   :  { %v395_v30 = vadd.f32 %v394_v29, %v2566_v45  ;;  %v396_v31 = vpop.f32.mrb[42].mxu0  ;;  %873 = vmatprep.mubr.bf16.mxu1 %v534_v26 }
 0x1a1   :  { %v397_v32 = vadd.f32 %v396_v31, %v2563_v44  ;;  %v398_v33 = vpop.f32.mrb[43].mxu0  ;;  %874 = vmatmul.mubr.bf16.gmra.mrb[36].mxu1 %v533_v25  ;;  %v491_v35 = vmax.f32 %v393_v28, 0.0 }
 0x1a2   :  { %v399_v34 = vadd.f32 %v398_v33, %v2566_v45  ;;  %v492_v37 = vmax.f32 %v395_v30, 0.0 }
 0x1a3   :  { %v493_v36 = vmax.f32 %v397_v32, 0.0 }
 0x1a4   :  { %v494_v38 = vmax.f32 %v399_v34, 0.0 }
 0x1a5   :  { %v535_v39 = vpack.c.bf16 %v493_v36, %v491_v35 }
 0x1a6   :  { %v536_v0 = vpack.c.bf16 %v494_v38, %v492_v37  ;;  %v402_v42 = vpop.f32.mrb[44].mxu0 }
 0x1a7   :  { %v403_v43 = vadd.f32 %v402_v42, %v2563_v44  ;;  %v404_v46 = vpop.f32.mrb[45].mxu0 }
 0x1a8   :  { %v405_v47 = vadd.f32 %v404_v46, %v2566_v45  ;;  %v406_v48 = vpop.f32.mrb[46].mxu0  ;;  %883 = vmatprep.mubr.bf16.mxu1 %v536_v0 }
 0x1a9   :  { %v407_v49 = vadd.f32 %v406_v48, %v2563_v44  ;;  %v408_v50 = vpop.f32.mrb[47].mxu0  ;;  %884 = vmatmul.mubr.bf16.gmra.mrb[40].mxu1 %v535_v39  ;;  %v495_v52 = vmax.f32 %v403_v43, 0.0 }
 0x1aa   :  { %v409_v51 = vadd.f32 %v408_v50, %v2566_v45  ;;  %v496_v54 = vmax.f32 %v405_v47, 0.0 }
 0x1ab   :  { %v497_v53 = vmax.f32 %v407_v49, 0.0 }
 0x1ac   :  { %v498_v55 = vmax.f32 %v409_v51, 0.0 }
 0x1ad   :  { %v537_v56 = vpack.c.bf16 %v497_v53, %v495_v52 }
 0x1ae   :  { %v538_v57 = vpack.c.bf16 %v498_v55, %v496_v54  ;;  %v412_v58 = vpop.f32.mrb[48].mxu0 }
 0x1af   :  { %v413_v59 = vadd.f32 %v412_v58, %v2563_v44  ;;  %v414_v60 = vpop.f32.mrb[49].mxu0  ;;  %v2237_v58 = vld [vmem:[#allocation10] sm:$0xff]  }
 0x1b0   :  { %v415_v61 = vadd.f32 %v414_v60, %v2566_v45  ;;  %v416_v62 = vpop.f32.mrb[50].mxu0  ;;  %893 = vmatprep.mubr.bf16.mxu1 %v538_v57  ;;  %v2236_v57 = vld [vmem:[#allocation10 + $0x40] sm:$0xff]  }
 0x1b1   :  { %v417_v63 = vadd.f32 %v416_v62, %v2563_v44  ;;  %v418_v1 = vpop.f32.mrb[51].mxu0  ;;  %894 = vmatmul.mubr.bf16.gmra.mrb[44].mxu1 %v537_v56  ;;  %v499_v5 = vmax.f32 %v413_v59, 0.0  ;;  %v579_v56 = vld [vmem:[%s2834_s4] sm:$0x3]  ;;  %2089 = vmatprep.subr.bf16.mxu1 %v2236_v57 }
 0x1b2   :  { %v419_v3 = vadd.f32 %v418_v1, %v2566_v45  ;;  %v500_v7 = vmax.f32 %v415_v61, 0.0  ;;  %1977 = vmatprep.subr.bf16.mxu0 %v2236_v57  ;;  %2097 = vmatpush3.bf16.msra.mxu1 %v2237_v58 }
 0x1b3   :  { %v501_v6 = vmax.f32 %v417_v63, 0.0 }
 0x1b4   :  { %v502_v8 = vmax.f32 %v419_v3, 0.0  ;;  %v2238_v3 = vld [vmem:[#allocation10 + $0x48] sm:$0xff]  }
 0x1b5   :  { %v539_v9 = vpack.c.bf16 %v501_v6, %v499_v5  ;;  %v2239_v5 = vld [vmem:[#allocation10 + $0x8] sm:$0xff]   ;;  %2090 = vmatprep.subr.bf16.mxu1 %v2238_v3 }
 0x1b6   :  { %v540_v10 = vpack.c.bf16 %v502_v8, %v500_v7  ;;  %v422_v11 = vpop.f32.mrb[52].mxu0  ;;  %v2240_v8 = vld [vmem:[#allocation10 + $0x50] sm:$0xff]   ;;  %2098 = vmatpush3.bf16.msra.mxu1 %v2239_v5 }
 0x1b7   :  { %v423_v12 = vadd.f32 %v422_v11, %v2563_v44  ;;  %v424_v13 = vpop.f32.mrb[53].mxu0  ;;  %2091 = vmatprep.subr.bf16.mxu1 %v2240_v8 }
 0x1b8   :  { %v425_v14 = vadd.f32 %v424_v13, %v2566_v45  ;;  %v426_v15 = vpop.f32.mrb[54].mxu0  ;;  %903 = vmatprep.mubr.bf16.mxu1 %v540_v10 }
 0x1b9   :  { %v427_v16 = vadd.f32 %v426_v15, %v2563_v44  ;;  %v428_v17 = vpop.f32.mrb[55].mxu0  ;;  %904 = vmatmul.mubr.bf16.gmra.mrb[48].mxu1 %v539_v9  ;;  %v503_v19 = vmax.f32 %v423_v12, 0.0 }
 0x1ba   :  { %v429_v18 = vadd.f32 %v428_v17, %v2566_v45  ;;  %v504_v21 = vmax.f32 %v425_v14, 0.0  ;;  %v2241_v14 = vld [vmem:[#allocation10 + $0x10] sm:$0xff]   ;;  %v2242_v17 = vld [vmem:[#allocation10 + $0x58] sm:$0xff]  }
 0x1bb   :  { %v505_v20 = vmax.f32 %v427_v16, 0.0  ;;  %2099 = vmatpush3.bf16.msra.mxu1 %v2241_v14 }
 0x1bc   :  { %v506_v22 = vmax.f32 %v429_v18, 0.0  ;;  %2092 = vmatprep.subr.bf16.mxu1 %v2242_v17 }
 0x1bd   :  { %v541_v23 = vpack.c.bf16 %v505_v20, %v503_v19 }
 0x1be   :  { %v542_v24 = vpack.c.bf16 %v506_v22, %v504_v21  ;;  %v432_v25 = vpop.f32.mrb[56].mxu0 }
 0x1bf   :  { %v433_v26 = vadd.f32 %v432_v25, %v2563_v44  ;;  %v434_v27 = vpop.f32.mrb[57].mxu0 }
 0x1c0   :  { %v435_v28 = vadd.f32 %v434_v27, %v2566_v45  ;;  %v436_v29 = vpop.f32.mrb[58].mxu0  ;;  %913 = vmatprep.mubr.bf16.mxu1 %v542_v24 }
 0x1c1   :  { %v437_v30 = vadd.f32 %v436_v29, %v2563_v44  ;;  %v438_v31 = vpop.f32.mrb[59].mxu0  ;;  %914 = vmatmul.mubr.bf16.gmra.mrb[52].mxu1 %v541_v23  ;;  %v507_v33 = vmax.f32 %v433_v26, 0.0  ;;  %v2243_v23 = vld [vmem:[#allocation10 + $0x18] sm:$0xff]   ;;  %v2244_v26 = vld [vmem:[#allocation10 + $0x60] sm:$0xff]  }
 0x1c2   :  { %v439_v32 = vadd.f32 %v438_v31, %v2566_v45  ;;  %v508_v35 = vmax.f32 %v435_v28, 0.0  ;;  %2100 = vmatpush3.bf16.msra.mxu1 %v2243_v23 }
 0x1c3   :  { %v509_v34 = vmax.f32 %v437_v30, 0.0  ;;  %2093 = vmatprep.subr.bf16.mxu1 %v2244_v26 }
 0x1c4   :  { %v510_v36 = vmax.f32 %v439_v32, 0.0  ;;  %v2245_v32 = vld [vmem:[#allocation10 + $0x20] sm:$0xff]  }
 0x1c5   :  { %v543_v37 = vpack.c.bf16 %v509_v34, %v507_v33 }
 0x1c6   :  { %v544_v38 = vpack.c.bf16 %v510_v36, %v508_v35  ;;  %v442_v39 = vpop.f32.mrb[60].mxu0  ;;  %v2246_v35 = vld [vmem:[#allocation10 + $0x68] sm:$0xff]   ;;  %2101 = vmatpush3.bf16.msra.mxu1 %v2245_v32 }
 0x1c7   :  { %v443_v0 = vadd.f32 %v442_v39, %v2563_v44  ;;  %v444_v42 = vpop.f32.mrb[61].mxu0  ;;  %2094 = vmatprep.subr.bf16.mxu1 %v2246_v35 }
 0x1c8   :  { %v445_v43 = vadd.f32 %v444_v42, %v2566_v45  ;;  %v446_v46 = vpop.f32.mrb[62].mxu0  ;;  %923 = vmatprep.mubr.bf16.mxu1 %v544_v38  ;;  %v2247_v42 = vld [vmem:[#allocation10 + $0x28] sm:$0xff]  }
 0x1c9   :  { %v447_v47 = vadd.f32 %v446_v46, %v2563_v44  ;;  %v448_v48 = vpop.f32.mrb[63].mxu0  ;;  %924 = vmatmul.mubr.bf16.gmra.mrb[56].mxu1 %v543_v37  ;;  %v511_v50 = vmax.f32 %v443_v0, 0.0  ;;  %v2636_v44 = vrot.slane %v579_v56, %v2555_v40 }
 0x1ca   :  { %v449_v49 = vadd.f32 %v448_v48, %v2566_v45  ;;  %v512_v52 = vmax.f32 %v445_v43, 0.0  ;;  %v2639_v45 = vrot.slane %v579_v56, %v2560_v41  ;;  %2102 = vmatpush3.bf16.msra.mxu1 %v2247_v42 }
 0x1cb   :  { %v513_v51 = vmax.f32 %v447_v47, 0.0  ;;  %v2248_v47 = vld [vmem:[#allocation10 + $0x70] sm:$0xff]  }
 0x1cc   :  { %v514_v53 = vmax.f32 %v449_v49, 0.0  ;;  %2095 = vmatprep.subr.bf16.mxu1 %v2248_v47 }
 0x1cd   :  { %v545_v54 = vpack.c.bf16 %v513_v51, %v511_v50 }
 0x1ce   :  { %v546_v55 = vpack.c.bf16 %v514_v53, %v512_v52  ;;  %v2249_v53 = vld [vmem:[#allocation10 + $0x30] sm:$0xff]  }
 0x1cf   :  { %2103 = vmatpush3.bf16.msra.mxu1 %v2249_v53 }
 0x1d0   :  { %933 = vmatprep.mubr.bf16.mxu1 %v546_v55 }
 0x1d1   :  { %934 = vmatmul.mubr.bf16.gmra.mrb[60].mxu1 %v545_v54 }
 0x22c   :  { %v785_v59 = vpop.f32.mrb[0].mxu1 }
 0x22d   :  { %v786_v60 = vadd.f32 %v785_v59, %v2636_v44  ;;  %v787_v61 = vpop.f32.mrb[1].mxu1 }
 0x22e   :  { %v788_v62 = vadd.f32 %v787_v61, %v2639_v45  ;;  %v789_v63 = vpop.f32.mrb[2].mxu1 }
 0x22f   :  { %v790_v1 = vadd.f32 %v789_v63, %v2636_v44  ;;  %v791_v2 = vpop.f32.mrb[3].mxu1  ;;  %v944_v6 = vmax.f32 %v786_v60, 0.0 }
 0x230   :  { %v792_v4 = vadd.f32 %v791_v2, %v2639_v45  ;;  %v945_v9 = vmax.f32 %v788_v62, 0.0 }
 0x231   :  { %v946_v7 = vmax.f32 %v790_v1, 0.0 }
 0x232   :  { %v947_v10 = vmax.f32 %v792_v4, 0.0 }
 0x233   :  { %v1008_v11 = vpack.c.bf16 %v946_v7, %v944_v6 }
 0x234   :  { %v1009_v12 = vpack.c.bf16 %v947_v10, %v945_v9  ;;  %v795_v13 = vpop.f32.mrb[4].mxu1 }
 0x235   :  { %v796_v15 = vadd.f32 %v795_v13, %v2636_v44  ;;  %v797_v16 = vpop.f32.mrb[5].mxu1 }
 0x236   :  { %v798_v18 = vadd.f32 %v797_v16, %v2639_v45  ;;  %v799_v19 = vpop.f32.mrb[6].mxu1  ;;  %1276 = vmatprep.mubr.bf16.mxu0 %v1009_v12 }
 0x237   :  { %v800_v20 = vadd.f32 %v799_v19, %v2636_v44  ;;  %v801_v21 = vpop.f32.mrb[7].mxu1  ;;  %1277 = vmatmul.mubr.bf16.vlgmr.msra.gmra.mrb[64].mxu0 %v1008_v11  ;;  %v948_v24 = vmax.f32 %v796_v15, 0.0 }
 0x238   :  { %v802_v22 = vadd.f32 %v801_v21, %v2639_v45  ;;  %1978 = vmatpush3.bf16.msra.mxu0 %v2237_v58  ;;  %v949_v27 = vmax.f32 %v798_v18, 0.0 }
 0x239   :  { %v950_v25 = vmax.f32 %v800_v20, 0.0  ;;  %1979 = vmatprep.subr.bf16.mxu0 %v2238_v3 }
 0x23a   :  { %v951_v28 = vmax.f32 %v802_v22, 0.0 }
 0x23b   :  { %v1010_v29 = vpack.c.bf16 %v950_v25, %v948_v24 }
 0x23c   :  { %v1011_v30 = vpack.c.bf16 %v951_v28, %v949_v27  ;;  %v805_v31 = vpop.f32.mrb[8].mxu1  ;;  %1980 = vmatpush3.bf16.msra.mxu0 %v2239_v5 }
 0x23d   :  { %v806_v33 = vadd.f32 %v805_v31, %v2636_v44  ;;  %v807_v34 = vpop.f32.mrb[9].mxu1  ;;  %1981 = vmatprep.subr.bf16.mxu0 %v2240_v8 }
 0x23e   :  { %v808_v36 = vadd.f32 %v807_v34, %v2639_v45  ;;  %v809_v37 = vpop.f32.mrb[10].mxu1  ;;  %1286 = vmatprep.mubr.bf16.mxu0 %v1011_v30 }
 0x23f   :  { %v810_v38 = vadd.f32 %v809_v37, %v2636_v44  ;;  %v811_v39 = vpop.f32.mrb[11].mxu1  ;;  %1287 = vmatmul.mubr.bf16.gmra.mrb[68].mxu0 %v1010_v29  ;;  %v952_v43 = vmax.f32 %v806_v33, 0.0 }
 0x240   :  { %v812_v0 = vadd.f32 %v811_v39, %v2639_v45  ;;  %1982 = vmatpush3.bf16.msra.mxu0 %v2241_v14  ;;  %v953_v48 = vmax.f32 %v808_v36, 0.0 }
 0x241   :  { %v954_v46 = vmax.f32 %v810_v38, 0.0  ;;  %1983 = vmatprep.subr.bf16.mxu0 %v2242_v17 }
 0x242   :  { %v955_v49 = vmax.f32 %v812_v0, 0.0 }
 0x243   :  { %v1012_v50 = vpack.c.bf16 %v954_v46, %v952_v43 }
 0x244   :  { %v1013_v51 = vpack.c.bf16 %v955_v49, %v953_v48  ;;  %v815_v52 = vpop.f32.mrb[12].mxu1  ;;  %1984 = vmatpush3.bf16.msra.mxu0 %v2243_v23 }
 0x245   :  { %v816_v54 = vadd.f32 %v815_v52, %v2636_v44  ;;  %v817_v55 = vpop.f32.mrb[13].mxu1  ;;  %1985 = vmatprep.subr.bf16.mxu0 %v2244_v26 }
 0x246   :  { %v818_v56 = vadd.f32 %v817_v55, %v2639_v45  ;;  %v819_v57 = vpop.f32.mrb[14].mxu1  ;;  %1296 = vmatprep.mubr.bf16.mxu0 %v1013_v51 }
 0x247   :  { %v820_v58 = vadd.f32 %v819_v57, %v2636_v44  ;;  %v821_v59 = vpop.f32.mrb[15].mxu1  ;;  %1297 = vmatmul.mubr.bf16.gmra.mrb[72].mxu0 %v1012_v50  ;;  %v956_v61 = vmax.f32 %v816_v54, 0.0 }
 0x248   :  { %v822_v60 = vadd.f32 %v821_v59, %v2639_v45  ;;  %1986 = vmatpush3.bf16.msra.mxu0 %v2245_v32  ;;  %v957_v63 = vmax.f32 %v818_v56, 0.0 }
 0x249   :  { %v958_v62 = vmax.f32 %v820_v58, 0.0  ;;  %1987 = vmatprep.subr.bf16.mxu0 %v2246_v35 }
 0x24a   :  { %v959_v1 = vmax.f32 %v822_v60, 0.0 }
 0x24b   :  { %v1014_v2 = vpack.c.bf16 %v958_v62, %v956_v61 }
 0x24c   :  { %v1015_v3 = vpack.c.bf16 %v959_v1, %v957_v63  ;;  %v825_v4 = vpop.f32.mrb[16].mxu1  ;;  %1988 = vmatpush3.bf16.msra.mxu0 %v2247_v42 }
 0x24d   :  { %v826_v5 = vadd.f32 %v825_v4, %v2636_v44  ;;  %v827_v6 = vpop.f32.mrb[17].mxu1  ;;  %1989 = vmatprep.subr.bf16.mxu0 %v2248_v47 }
 0x24e   :  { %v828_v7 = vadd.f32 %v827_v6, %v2639_v45  ;;  %v829_v8 = vpop.f32.mrb[18].mxu1  ;;  %1306 = vmatprep.mubr.bf16.mxu0 %v1015_v3 }
 0x24f   :  { %v830_v9 = vadd.f32 %v829_v8, %v2636_v44  ;;  %v831_v10 = vpop.f32.mrb[19].mxu1  ;;  %1307 = vmatmul.mubr.bf16.gmra.mrb[76].mxu0 %v1014_v2  ;;  %v960_v12 = vmax.f32 %v826_v5, 0.0 }
 0x250   :  { %v832_v11 = vadd.f32 %v831_v10, %v2639_v45  ;;  %1990 = vmatpush3.bf16.msra.mxu0 %v2249_v53  ;;  %v961_v14 = vmax.f32 %v828_v7, 0.0 }
 0x251   :  { %v962_v13 = vmax.f32 %v830_v9, 0.0 }
 0x252   :  { %v963_v15 = vmax.f32 %v832_v11, 0.0 }
 0x253   :  { %v1016_v16 = vpack.c.bf16 %v962_v13, %v960_v12 }
 0x254   :  { %v1017_v17 = vpack.c.bf16 %v963_v15, %v961_v14  ;;  %v835_v18 = vpop.f32.mrb[20].mxu1 }
 0x255   :  { %v836_v19 = vadd.f32 %v835_v18, %v2636_v44  ;;  %v837_v20 = vpop.f32.mrb[21].mxu1 }
 0x256   :  { %v838_v21 = vadd.f32 %v837_v20, %v2639_v45  ;;  %v839_v22 = vpop.f32.mrb[22].mxu1  ;;  %1316 = vmatprep.mubr.bf16.mxu0 %v1017_v17 }
 0x257   :  { %v840_v23 = vadd.f32 %v839_v22, %v2636_v44  ;;  %v841_v24 = vpop.f32.mrb[23].mxu1  ;;  %1317 = vmatmul.mubr.bf16.gmra.mrb[80].mxu0 %v1016_v16  ;;  %v964_v26 = vmax.f32 %v836_v19, 0.0 }
 0x258   :  { %v842_v25 = vadd.f32 %v841_v24, %v2639_v45  ;;  %v965_v28 = vmax.f32 %v838_v21, 0.0 }
 0x259   :  { %v966_v27 = vmax.f32 %v840_v23, 0.0 }
 0x25a   :  { %v967_v29 = vmax.f32 %v842_v25, 0.0 }
 0x25b   :  { %v1018_v30 = vpack.c.bf16 %v966_v27, %v964_v26 }
 0x25c   :  { %v1019_v31 = vpack.c.bf16 %v967_v29, %v965_v28  ;;  %v845_v32 = vpop.f32.mrb[24].mxu1 }
 0x25d   :  { %v846_v33 = vadd.f32 %v845_v32, %v2636_v44  ;;  %v847_v34 = vpop.f32.mrb[25].mxu1 }
 0x25e   :  { %v848_v35 = vadd.f32 %v847_v34, %v2639_v45  ;;  %v849_v36 = vpop.f32.mrb[26].mxu1  ;;  %1326 = vmatprep.mubr.bf16.mxu0 %v1019_v31 }
 0x25f   :  { %v850_v37 = vadd.f32 %v849_v36, %v2636_v44  ;;  %v851_v38 = vpop.f32.mrb[27].mxu1  ;;  %1327 = vmatmul.mubr.bf16.gmra.mrb[84].mxu0 %v1018_v30  ;;  %v968_v0 = vmax.f32 %v846_v33, 0.0 }
 0x260   :  { %v852_v39 = vadd.f32 %v851_v38, %v2639_v45  ;;  %v969_v43 = vmax.f32 %v848_v35, 0.0 }
 0x261   :  { %v970_v42 = vmax.f32 %v850_v37, 0.0 }
 0x262   :  { %v971_v46 = vmax.f32 %v852_v39, 0.0 }
 0x263   :  { %v1020_v47 = vpack.c.bf16 %v970_v42, %v968_v0 }
 0x264   :  { %v1021_v48 = vpack.c.bf16 %v971_v46, %v969_v43  ;;  %v855_v49 = vpop.f32.mrb[28].mxu1 }
 0x265   :  { %v856_v50 = vadd.f32 %v855_v49, %v2636_v44  ;;  %v857_v51 = vpop.f32.mrb[29].mxu1 }
 0x266   :  { %v858_v52 = vadd.f32 %v857_v51, %v2639_v45  ;;  %v859_v53 = vpop.f32.mrb[30].mxu1  ;;  %1336 = vmatprep.mubr.bf16.mxu0 %v1021_v48 }
 0x267   :  { %v860_v54 = vadd.f32 %v859_v53, %v2636_v44  ;;  %v861_v55 = vpop.f32.mrb[31].mxu1  ;;  %1337 = vmatmul.mubr.bf16.gmra.mrb[88].mxu0 %v1020_v47  ;;  %v972_v57 = vmax.f32 %v856_v50, 0.0 }
 0x268   :  { %v862_v56 = vadd.f32 %v861_v55, %v2639_v45  ;;  %v973_v59 = vmax.f32 %v858_v52, 0.0 }
 0x269   :  { %v974_v58 = vmax.f32 %v860_v54, 0.0 }
 0x26a   :  { %v975_v60 = vmax.f32 %v862_v56, 0.0 }
 0x26b   :  { %v1022_v61 = vpack.c.bf16 %v974_v58, %v972_v57 }
 0x26c   :  { %v1023_v62 = vpack.c.bf16 %v975_v60, %v973_v59  ;;  %v865_v63 = vpop.f32.mrb[32].mxu1 }
 0x26d   :  { %v866_v1 = vadd.f32 %v865_v63, %v2636_v44  ;;  %v867_v2 = vpop.f32.mrb[33].mxu1 }
 0x26e   :  { %v868_v3 = vadd.f32 %v867_v2, %v2639_v45  ;;  %v869_v4 = vpop.f32.mrb[34].mxu1  ;;  %1346 = vmatprep.mubr.bf16.mxu0 %v1023_v62 }
 0x26f   :  { %v870_v5 = vadd.f32 %v869_v4, %v2636_v44  ;;  %v871_v6 = vpop.f32.mrb[35].mxu1  ;;  %1347 = vmatmul.mubr.bf16.gmra.mrb[92].mxu0 %v1022_v61  ;;  %v976_v8 = vmax.f32 %v866_v1, 0.0 }
 0x270   :  { %v872_v7 = vadd.f32 %v871_v6, %v2639_v45  ;;  %v977_v10 = vmax.f32 %v868_v3, 0.0  ;;  %v2250_v3 = vld [vmem:[#allocation10 + $0x78] sm:$0xff]  }
 0x271   :  { %v978_v9 = vmax.f32 %v870_v5, 0.0  ;;  %v2251_v5 = vld [vmem:[#allocation10 + $0x38] sm:$0xff]   ;;  %1991 = vmatprep.subr.bf16.mxu0 %v2250_v3  ;;  %2096 = vmatprep.subr.bf16.mxu1 %v2250_v3 }
 0x272   :  { %v979_v11 = vmax.f32 %v872_v7, 0.0  ;;  %1992 = vmatpush3.bf16.msra.mxu0 %v2251_v5  ;;  %2104 = vmatpush3.bf16.msra.mxu1 %v2251_v5 }
 0x273   :  { %v1024_v12 = vpack.c.bf16 %v978_v9, %v976_v8 }
 0x274   :  { %v1025_v13 = vpack.c.bf16 %v979_v11, %v977_v10  ;;  %v875_v14 = vpop.f32.mrb[36].mxu1 }
 0x275   :  { %v876_v15 = vadd.f32 %v875_v14, %v2636_v44  ;;  %v877_v16 = vpop.f32.mrb[37].mxu1 }
 0x276   :  { %v878_v17 = vadd.f32 %v877_v16, %v2639_v45  ;;  %v879_v18 = vpop.f32.mrb[38].mxu1  ;;  %1356 = vmatprep.mubr.bf16.mxu0 %v1025_v13 }
 0x277   :  { %v880_v19 = vadd.f32 %v879_v18, %v2636_v44  ;;  %v881_v20 = vpop.f32.mrb[39].mxu1  ;;  %1357 = vmatmul.mubr.bf16.gmra.mrb[96].mxu0 %v1024_v12  ;;  %v980_v22 = vmax.f32 %v876_v15, 0.0 }
 0x278   :  { %v882_v21 = vadd.f32 %v881_v20, %v2639_v45  ;;  %v981_v24 = vmax.f32 %v878_v17, 0.0 }
 0x279   :  { %v982_v23 = vmax.f32 %v880_v19, 0.0 }
 0x27a   :  { %v983_v25 = vmax.f32 %v882_v21, 0.0 }
 0x27b   :  { %v1026_v26 = vpack.c.bf16 %v982_v23, %v980_v22 }
 0x27c   :  { %v1027_v27 = vpack.c.bf16 %v983_v25, %v981_v24  ;;  %v885_v28 = vpop.f32.mrb[40].mxu1 }
 0x27d   :  { %v886_v29 = vadd.f32 %v885_v28, %v2636_v44  ;;  %v887_v30 = vpop.f32.mrb[41].mxu1 }
 0x27e   :  { %v888_v31 = vadd.f32 %v887_v30, %v2639_v45  ;;  %v889_v32 = vpop.f32.mrb[42].mxu1  ;;  %1366 = vmatprep.mubr.bf16.mxu0 %v1027_v27 }
 0x27f   :  { %v890_v33 = vadd.f32 %v889_v32, %v2636_v44  ;;  %v891_v34 = vpop.f32.mrb[43].mxu1  ;;  %1367 = vmatmul.mubr.bf16.gmra.mrb[100].mxu0 %v1026_v26  ;;  %v984_v36 = vmax.f32 %v886_v29, 0.0 }
 0x280   :  { %v892_v35 = vadd.f32 %v891_v34, %v2639_v45  ;;  %v985_v38 = vmax.f32 %v888_v31, 0.0 }
 0x281   :  { %v986_v37 = vmax.f32 %v890_v33, 0.0 }
 0x282   :  { %v987_v39 = vmax.f32 %v892_v35, 0.0 }
 0x283   :  { %v1028_v0 = vpack.c.bf16 %v986_v37, %v984_v36 }
 0x284   :  { %v1029_v42 = vpack.c.bf16 %v987_v39, %v985_v38  ;;  %v895_v43 = vpop.f32.mrb[44].mxu1 }
 0x285   :  { %v896_v46 = vadd.f32 %v895_v43, %v2636_v44  ;;  %v897_v47 = vpop.f32.mrb[45].mxu1 }
 0x286   :  { %v898_v48 = vadd.f32 %v897_v47, %v2639_v45  ;;  %v899_v49 = vpop.f32.mrb[46].mxu1  ;;  %1376 = vmatprep.mubr.bf16.mxu0 %v1029_v42 }
 0x287   :  { %v900_v50 = vadd.f32 %v899_v49, %v2636_v44  ;;  %v901_v51 = vpop.f32.mrb[47].mxu1  ;;  %1377 = vmatmul.mubr.bf16.gmra.mrb[104].mxu0 %v1028_v0  ;;  %v988_v53 = vmax.f32 %v896_v46, 0.0 }
 0x288   :  { %v902_v52 = vadd.f32 %v901_v51, %v2639_v45  ;;  %v989_v55 = vmax.f32 %v898_v48, 0.0 }
 0x289   :  { %v990_v54 = vmax.f32 %v900_v50, 0.0 }
 0x28a   :  { %v991_v56 = vmax.f32 %v902_v52, 0.0 }
 0x28b   :  { %v1030_v57 = vpack.c.bf16 %v990_v54, %v988_v53 }
 0x28c   :  { %v1031_v58 = vpack.c.bf16 %v991_v56, %v989_v55  ;;  %v905_v59 = vpop.f32.mrb[48].mxu1 }
 0x28d   :  { %v906_v60 = vadd.f32 %v905_v59, %v2636_v44  ;;  %v907_v61 = vpop.f32.mrb[49].mxu1 }
 0x28e   :  { %v908_v62 = vadd.f32 %v907_v61, %v2639_v45  ;;  %v909_v63 = vpop.f32.mrb[50].mxu1  ;;  %1386 = vmatprep.mubr.bf16.mxu0 %v1031_v58 }
 0x28f   :  { %v910_v1 = vadd.f32 %v909_v63, %v2636_v44  ;;  %v911_v2 = vpop.f32.mrb[51].mxu1  ;;  %1387 = vmatmul.mubr.bf16.gmra.mrb[108].mxu0 %v1030_v57  ;;  %v992_v6 = vmax.f32 %v906_v60, 0.0  ;;  %v1072_v57 = vld [vmem:[%s2836_s6] sm:$0x3] }
 0x290   :  { %v912_v4 = vadd.f32 %v911_v2, %v2639_v45  ;;  %v993_v8 = vmax.f32 %v908_v62, 0.0  ;;  %v2709_v58 = vrot.slane %v1072_v57, %v2555_v40 }
 0x291   :  { %v994_v7 = vmax.f32 %v910_v1, 0.0 }
 0x292   :  { %v995_v9 = vmax.f32 %v912_v4, 0.0 }
 0x293   :  { %v1032_v10 = vpack.c.bf16 %v994_v7, %v992_v6 }
 0x294   :  { %v1033_v11 = vpack.c.bf16 %v995_v9, %v993_v8  ;;  %v915_v12 = vpop.f32.mrb[52].mxu1 }
 0x295   :  { %v916_v13 = vadd.f32 %v915_v12, %v2636_v44  ;;  %v917_v14 = vpop.f32.mrb[53].mxu1 }
 0x296   :  { %v918_v15 = vadd.f32 %v917_v14, %v2639_v45  ;;  %v919_v16 = vpop.f32.mrb[54].mxu1  ;;  %1396 = vmatprep.mubr.bf16.mxu0 %v1033_v11 }
 0x297   :  { %v920_v17 = vadd.f32 %v919_v16, %v2636_v44  ;;  %v921_v18 = vpop.f32.mrb[55].mxu1  ;;  %1397 = vmatmul.mubr.bf16.gmra.mrb[112].mxu0 %v1032_v10  ;;  %v996_v20 = vmax.f32 %v916_v13, 0.0 }
 0x298   :  { %v922_v19 = vadd.f32 %v921_v18, %v2639_v45  ;;  %v997_v22 = vmax.f32 %v918_v15, 0.0 }
 0x299   :  { %v998_v21 = vmax.f32 %v920_v17, 0.0 }
 0x29a   :  { %v999_v23 = vmax.f32 %v922_v19, 0.0 }
 0x29b   :  { %v1034_v24 = vpack.c.bf16 %v998_v21, %v996_v20 }
 0x29c   :  { %v1035_v25 = vpack.c.bf16 %v999_v23, %v997_v22  ;;  %v925_v26 = vpop.f32.mrb[56].mxu1 }
 0x29d   :  { %v926_v27 = vadd.f32 %v925_v26, %v2636_v44  ;;  %v927_v28 = vpop.f32.mrb[57].mxu1 }
 0x29e   :  { %v928_v29 = vadd.f32 %v927_v28, %v2639_v45  ;;  %v929_v30 = vpop.f32.mrb[58].mxu1  ;;  %1406 = vmatprep.mubr.bf16.mxu0 %v1035_v25 }
 0x29f   :  { %v930_v31 = vadd.f32 %v929_v30, %v2636_v44  ;;  %v931_v32 = vpop.f32.mrb[59].mxu1  ;;  %1407 = vmatmul.mubr.bf16.gmra.mrb[116].mxu0 %v1034_v24  ;;  %v1000_v34 = vmax.f32 %v926_v27, 0.0 }
 0x2a0   :  { %v932_v33 = vadd.f32 %v931_v32, %v2639_v45  ;;  %v1001_v36 = vmax.f32 %v928_v29, 0.0 }
 0x2a1   :  { %v1002_v35 = vmax.f32 %v930_v31, 0.0 }
 0x2a2   :  { %v1003_v37 = vmax.f32 %v932_v33, 0.0 }
 0x2a3   :  { %v1036_v38 = vpack.c.bf16 %v1002_v35, %v1000_v34 }
 0x2a4   :  { %v1037_v39 = vpack.c.bf16 %v1003_v37, %v1001_v36  ;;  %v935_v0 = vpop.f32.mrb[60].mxu1 }
 0x2a5   :  { %v936_v42 = vadd.f32 %v935_v0, %v2636_v44  ;;  %v937_v43 = vpop.f32.mrb[61].mxu1 }
 0x2a6   :  { %v938_v46 = vadd.f32 %v937_v43, %v2639_v45  ;;  %v939_v47 = vpop.f32.mrb[62].mxu1  ;;  %1416 = vmatprep.mubr.bf16.mxu0 %v1037_v39 }
 0x2a7   :  { %v940_v48 = vadd.f32 %v939_v47, %v2636_v44  ;;  %v941_v49 = vpop.f32.mrb[63].mxu1  ;;  %1417 = vmatmul.mubr.bf16.gmra.mrb[120].mxu0 %v1036_v38  ;;  %v1004_v51 = vmax.f32 %v936_v42, 0.0  ;;  %v2712_v44 = vrot.slane %v1072_v57, %v2560_v41 }
 0x2a8   :  { %v942_v50 = vadd.f32 %v941_v49, %v2639_v45  ;;  %v1005_v53 = vmax.f32 %v938_v46, 0.0 }
 0x2a9   :  { %v1006_v52 = vmax.f32 %v940_v48, 0.0 }
 0x2aa   :  { %v1007_v54 = vmax.f32 %v942_v50, 0.0 }
 0x2ab   :  { %v1038_v55 = vpack.c.bf16 %v1006_v52, %v1004_v51 }
 0x2ac   :  { %v1039_v56 = vpack.c.bf16 %v1007_v54, %v1005_v53 }
 0x2ae   :  { %1426 = vmatprep.mubr.bf16.mxu0 %v1039_v56 }
 0x2af   :  { %1427 = vmatmul.mubr.bf16.gmra.mrb[124].mxu0 %v1038_v55 }
 0x30a   :  { %v1278_v59 = vpop.f32.mrb[64].mxu0 }
 0x30b   :  { %v1279_v45 = vadd.f32 %v1278_v59, %v2709_v58  ;;  %v1280_v60 = vpop.f32.mrb[65].mxu0 }
 0x30c   :  { %v1281_v61 = vadd.f32 %v1280_v60, %v2712_v44  ;;  %v1282_v62 = vpop.f32.mrb[66].mxu0 }
 0x30d   :  { %v1283_v63 = vadd.f32 %v1282_v62, %v2709_v58  ;;  %v1284_v1 = vpop.f32.mrb[67].mxu0  ;;  %v1437_v3 = vmax.f32 %v1279_v45, 0.0 }
 0x30e   :  { %v1285_v2 = vadd.f32 %v1284_v1, %v2712_v44  ;;  %v1438_v5 = vmax.f32 %v1281_v61, 0.0 }
 0x30f   :  { %v1439_v4 = vmax.f32 %v1283_v63, 0.0 }
 0x310   :  { %v1440_v40 = vmax.f32 %v1285_v2, 0.0 }
 0x311   :  { %v1501_v6 = vpack.c.bf16 %v1439_v4, %v1437_v3 }
 0x312   :  { %v1502_v7 = vpack.c.bf16 %v1440_v40, %v1438_v5  ;;  %v1288_v41 = vpop.f32.mrb[68].mxu0 }
 0x313   :  { %v1289_v8 = vadd.f32 %v1288_v41, %v2709_v58  ;;  %v1290_v9 = vpop.f32.mrb[69].mxu0 }
 0x314   :  { %v1291_v10 = vadd.f32 %v1290_v9, %v2712_v44  ;;  %v1292_v11 = vpop.f32.mrb[70].mxu0  ;;  %1700 = vmatprep.mubr.bf16.mxu0 %v1502_v7 }
 0x315   :  { %v1293_v12 = vadd.f32 %v1292_v11, %v2709_v58  ;;  %v1294_v13 = vpop.f32.mrb[71].mxu0  ;;  %1701 = vmatmul.mubr.bf16.vlgmr.msra.gmra.mrb[128].mxu0 %v1501_v6  ;;  %v1441_v15 = vmax.f32 %v1289_v8, 0.0 }
 0x316   :  { %v1295_v14 = vadd.f32 %v1294_v13, %v2712_v44  ;;  %v1442_v17 = vmax.f32 %v1291_v10, 0.0 }
 0x317   :  { %v1443_v16 = vmax.f32 %v1293_v12, 0.0 }
 0x318   :  { %v1444_v18 = vmax.f32 %v1295_v14, 0.0 }
 0x319   :  { %v1503_v19 = vpack.c.bf16 %v1443_v16, %v1441_v15 }
 0x31a   :  { %v1504_v20 = vpack.c.bf16 %v1444_v18, %v1442_v17  ;;  %v1298_v21 = vpop.f32.mrb[72].mxu0 }
 0x31b   :  { %v1299_v22 = vadd.f32 %v1298_v21, %v2709_v58  ;;  %v1300_v23 = vpop.f32.mrb[73].mxu0 }
 0x31c   :  { %v1301_v24 = vadd.f32 %v1300_v23, %v2712_v44  ;;  %v1302_v25 = vpop.f32.mrb[74].mxu0  ;;  %1708 = vmatprep.mubr.bf16.mxu0 %v1504_v20 }
 0x31d   :  { %v1303_v26 = vadd.f32 %v1302_v25, %v2709_v58  ;;  %v1304_v27 = vpop.f32.mrb[75].mxu0  ;;  %1709 = vmatmul.mubr.bf16.gmra.mrb[132].mxu0 %v1503_v19  ;;  %v1445_v29 = vmax.f32 %v1299_v22, 0.0 }
 0x31e   :  { %v1305_v28 = vadd.f32 %v1304_v27, %v2712_v44  ;;  %v1446_v31 = vmax.f32 %v1301_v24, 0.0 }
 0x31f   :  { %v1447_v30 = vmax.f32 %v1303_v26, 0.0 }
 0x320   :  { %v1448_v32 = vmax.f32 %v1305_v28, 0.0 }
 0x321   :  { %v1505_v33 = vpack.c.bf16 %v1447_v30, %v1445_v29 }
 0x322   :  { %v1506_v34 = vpack.c.bf16 %v1448_v32, %v1446_v31  ;;  %v1308_v35 = vpop.f32.mrb[76].mxu0 }
 0x323   :  { %v1309_v36 = vadd.f32 %v1308_v35, %v2709_v58  ;;  %v1310_v37 = vpop.f32.mrb[77].mxu0 }
 0x324   :  { %v1311_v38 = vadd.f32 %v1310_v37, %v2712_v44  ;;  %v1312_v39 = vpop.f32.mrb[78].mxu0  ;;  %1716 = vmatprep.mubr.bf16.mxu1 %v1506_v34 }
 0x325   :  { %v1313_v0 = vadd.f32 %v1312_v39, %v2709_v58  ;;  %v1314_v42 = vpop.f32.mrb[79].mxu0  ;;  %1717 = vmatmul.mubr.bf16.vlgmr.msra.gmra.mrb[64].mxu1 %v1505_v33  ;;  %v1449_v46 = vmax.f32 %v1309_v36, 0.0 }
 0x326   :  { %v1315_v43 = vadd.f32 %v1314_v42, %v2712_v44  ;;  %v1450_v48 = vmax.f32 %v1311_v38, 0.0 }
 0x327   :  { %v1451_v47 = vmax.f32 %v1313_v0, 0.0 }
 0x328   :  { %v1452_v49 = vmax.f32 %v1315_v43, 0.0 }
 0x329   :  { %v1507_v50 = vpack.c.bf16 %v1451_v47, %v1449_v46 }
 0x32a   :  { %v1508_v51 = vpack.c.bf16 %v1452_v49, %v1450_v48  ;;  %v1318_v52 = vpop.f32.mrb[80].mxu0 }
 0x32b   :  { %v1319_v53 = vadd.f32 %v1318_v52, %v2709_v58  ;;  %v1320_v54 = vpop.f32.mrb[81].mxu0 }
 0x32c   :  { %v1321_v55 = vadd.f32 %v1320_v54, %v2712_v44  ;;  %v1322_v56 = vpop.f32.mrb[82].mxu0  ;;  %1724 = vmatprep.mubr.bf16.mxu1 %v1508_v51 }
 0x32d   :  { %v1323_v57 = vadd.f32 %v1322_v56, %v2709_v58  ;;  %v1324_v59 = vpop.f32.mrb[83].mxu0  ;;  %1725 = vmatmul.mubr.bf16.gmra.mrb[68].mxu1 %v1507_v50  ;;  %v1453_v60 = vmax.f32 %v1319_v53, 0.0 }
 0x32e   :  { %v1325_v45 = vadd.f32 %v1324_v59, %v2712_v44  ;;  %v1454_v62 = vmax.f32 %v1321_v55, 0.0 }
 0x32f   :  { %v1455_v61 = vmax.f32 %v1323_v57, 0.0 }
 0x330   :  { %v1456_v63 = vmax.f32 %v1325_v45, 0.0 }
 0x331   :  { %v1509_v1 = vpack.c.bf16 %v1455_v61, %v1453_v60 }
 0x332   :  { %v1510_v2 = vpack.c.bf16 %v1456_v63, %v1454_v62  ;;  %v1328_v3 = vpop.f32.mrb[84].mxu0 }
 0x333   :  { %v1329_v4 = vadd.f32 %v1328_v3, %v2709_v58  ;;  %v1330_v5 = vpop.f32.mrb[85].mxu0 }
 0x334   :  { %v1331_v40 = vadd.f32 %v1330_v5, %v2712_v44  ;;  %v1332_v6 = vpop.f32.mrb[86].mxu0  ;;  %1732 = vmatprep.mubr.bf16.mxu1 %v1510_v2 }
 0x335   :  { %v1333_v7 = vadd.f32 %v1332_v6, %v2709_v58  ;;  %v1334_v41 = vpop.f32.mrb[87].mxu0  ;;  %1733 = vmatmul.mubr.bf16.gmra.mrb[72].mxu1 %v1509_v1  ;;  %v1457_v9 = vmax.f32 %v1329_v4, 0.0 }
 0x336   :  { %v1335_v8 = vadd.f32 %v1334_v41, %v2712_v44  ;;  %v1458_v11 = vmax.f32 %v1331_v40, 0.0 }
 0x337   :  { %v1459_v10 = vmax.f32 %v1333_v7, 0.0 }
 0x338   :  { %v1460_v12 = vmax.f32 %v1335_v8, 0.0 }
 0x339   :  { %v1511_v13 = vpack.c.bf16 %v1459_v10, %v1457_v9 }
 0x33a   :  { %v1512_v14 = vpack.c.bf16 %v1460_v12, %v1458_v11  ;;  %v1338_v15 = vpop.f32.mrb[88].mxu0 }
 0x33b   :  { %v1339_v16 = vadd.f32 %v1338_v15, %v2709_v58  ;;  %v1340_v17 = vpop.f32.mrb[89].mxu0 }
 0x33c   :  { %v1341_v18 = vadd.f32 %v1340_v17, %v2712_v44  ;;  %v1342_v19 = vpop.f32.mrb[90].mxu0  ;;  %1740 = vmatprep.mubr.bf16.mxu1 %v1512_v14 }
 0x33d   :  { %v1343_v20 = vadd.f32 %v1342_v19, %v2709_v58  ;;  %v1344_v21 = vpop.f32.mrb[91].mxu0  ;;  %1741 = vmatmul.mubr.bf16.gmra.mrb[76].mxu1 %v1511_v13  ;;  %v1461_v23 = vmax.f32 %v1339_v16, 0.0 }
 0x33e   :  { %v1345_v22 = vadd.f32 %v1344_v21, %v2712_v44  ;;  %v1462_v25 = vmax.f32 %v1341_v18, 0.0 }
 0x33f   :  { %v1463_v24 = vmax.f32 %v1343_v20, 0.0 }
 0x340   :  { %v1464_v26 = vmax.f32 %v1345_v22, 0.0 }
 0x341   :  { %v1513_v27 = vpack.c.bf16 %v1463_v24, %v1461_v23 }
 0x342   :  { %v1514_v28 = vpack.c.bf16 %v1464_v26, %v1462_v25  ;;  %v1348_v29 = vpop.f32.mrb[92].mxu0 }
 0x343   :  { %v1349_v30 = vadd.f32 %v1348_v29, %v2709_v58  ;;  %v1350_v31 = vpop.f32.mrb[93].mxu0 }
 0x344   :  { %v1351_v32 = vadd.f32 %v1350_v31, %v2712_v44  ;;  %v1352_v33 = vpop.f32.mrb[94].mxu0  ;;  %1748 = vmatprep.mubr.bf16.mxu1 %v1514_v28 }
 0x345   :  { %v1353_v34 = vadd.f32 %v1352_v33, %v2709_v58  ;;  %v1354_v35 = vpop.f32.mrb[95].mxu0  ;;  %1749 = vmatmul.mubr.bf16.gmra.mrb[80].mxu1 %v1513_v27  ;;  %v1465_v37 = vmax.f32 %v1349_v30, 0.0 }
 0x346   :  { %v1355_v36 = vadd.f32 %v1354_v35, %v2712_v44  ;;  %v1466_v39 = vmax.f32 %v1351_v32, 0.0 }
 0x347   :  { %v1467_v38 = vmax.f32 %v1353_v34, 0.0 }
 0x348   :  { %v1468_v0 = vmax.f32 %v1355_v36, 0.0 }
 0x349   :  { %v1515_v42 = vpack.c.bf16 %v1467_v38, %v1465_v37 }
 0x34a   :  { %v1516_v43 = vpack.c.bf16 %v1468_v0, %v1466_v39  ;;  %v1358_v46 = vpop.f32.mrb[96].mxu0 }
 0x34b   :  { %v1359_v47 = vadd.f32 %v1358_v46, %v2709_v58  ;;  %v1360_v48 = vpop.f32.mrb[97].mxu0 }
 0x34c   :  { %v1361_v49 = vadd.f32 %v1360_v48, %v2712_v44  ;;  %v1362_v50 = vpop.f32.mrb[98].mxu0  ;;  %1756 = vmatprep.mubr.bf16.mxu1 %v1516_v43 }
 0x34d   :  { %v1363_v51 = vadd.f32 %v1362_v50, %v2709_v58  ;;  %v1364_v52 = vpop.f32.mrb[99].mxu0  ;;  %1757 = vmatmul.mubr.bf16.gmra.mrb[84].mxu1 %v1515_v42  ;;  %v1469_v54 = vmax.f32 %v1359_v47, 0.0 }
 0x34e   :  { %v1365_v53 = vadd.f32 %v1364_v52, %v2712_v44  ;;  %v1470_v56 = vmax.f32 %v1361_v49, 0.0 }
 0x34f   :  { %v1471_v55 = vmax.f32 %v1363_v51, 0.0 }
 0x350   :  { %v1472_v57 = vmax.f32 %v1365_v53, 0.0 }
 0x351   :  { %v1517_v59 = vpack.c.bf16 %v1471_v55, %v1469_v54 }
 0x352   :  { %v1518_v45 = vpack.c.bf16 %v1472_v57, %v1470_v56  ;;  %v1368_v60 = vpop.f32.mrb[100].mxu0 }
 0x353   :  { %v1369_v61 = vadd.f32 %v1368_v60, %v2709_v58  ;;  %v1370_v62 = vpop.f32.mrb[101].mxu0 }
 0x354   :  { %v1371_v63 = vadd.f32 %v1370_v62, %v2712_v44  ;;  %v1372_v1 = vpop.f32.mrb[102].mxu0  ;;  %1764 = vmatprep.mubr.bf16.mxu1 %v1518_v45 }
 0x355   :  { %v1373_v2 = vadd.f32 %v1372_v1, %v2709_v58  ;;  %v1374_v3 = vpop.f32.mrb[103].mxu0  ;;  %1765 = vmatmul.mubr.bf16.gmra.mrb[88].mxu1 %v1517_v59  ;;  %v1473_v5 = vmax.f32 %v1369_v61, 0.0 }
 0x356   :  { %v1375_v4 = vadd.f32 %v1374_v3, %v2712_v44  ;;  %v1474_v6 = vmax.f32 %v1371_v63, 0.0 }
 0x357   :  { %v1475_v40 = vmax.f32 %v1373_v2, 0.0 }
 0x358   :  { %v1476_v7 = vmax.f32 %v1375_v4, 0.0 }
 0x359   :  { %v1519_v41 = vpack.c.bf16 %v1475_v40, %v1473_v5 }
 0x35a   :  { %v1520_v8 = vpack.c.bf16 %v1476_v7, %v1474_v6  ;;  %v1378_v9 = vpop.f32.mrb[104].mxu0 }
 0x35b   :  { %v1379_v10 = vadd.f32 %v1378_v9, %v2709_v58  ;;  %v1380_v11 = vpop.f32.mrb[105].mxu0 }
 0x35c   :  { %v1381_v12 = vadd.f32 %v1380_v11, %v2712_v44  ;;  %v1382_v13 = vpop.f32.mrb[106].mxu0  ;;  %1772 = vmatprep.mubr.bf16.mxu1 %v1520_v8 }
 0x35d   :  { %v1383_v14 = vadd.f32 %v1382_v13, %v2709_v58  ;;  %v1384_v15 = vpop.f32.mrb[107].mxu0  ;;  %1773 = vmatmul.mubr.bf16.gmra.mrb[92].mxu1 %v1519_v41  ;;  %v1477_v17 = vmax.f32 %v1379_v10, 0.0 }
 0x35e   :  { %v1385_v16 = vadd.f32 %v1384_v15, %v2712_v44  ;;  %v1478_v19 = vmax.f32 %v1381_v12, 0.0 }
 0x35f   :  { %v1479_v18 = vmax.f32 %v1383_v14, 0.0 }
 0x360   :  { %v1480_v20 = vmax.f32 %v1385_v16, 0.0 }
 0x361   :  { %v1521_v21 = vpack.c.bf16 %v1479_v18, %v1477_v17 }
 0x362   :  { %v1522_v22 = vpack.c.bf16 %v1480_v20, %v1478_v19  ;;  %v1388_v23 = vpop.f32.mrb[108].mxu0 }
 0x363   :  { %v1389_v24 = vadd.f32 %v1388_v23, %v2709_v58  ;;  %v1390_v25 = vpop.f32.mrb[109].mxu0 }
 0x364   :  { %v1391_v26 = vadd.f32 %v1390_v25, %v2712_v44  ;;  %v1392_v27 = vpop.f32.mrb[110].mxu0  ;;  %1780 = vmatprep.mubr.bf16.mxu1 %v1522_v22 }
 0x365   :  { %v1393_v28 = vadd.f32 %v1392_v27, %v2709_v58  ;;  %v1394_v29 = vpop.f32.mrb[111].mxu0  ;;  %1781 = vmatmul.mubr.bf16.gmra.mrb[96].mxu1 %v1521_v21  ;;  %v1481_v31 = vmax.f32 %v1389_v24, 0.0 }
 0x366   :  { %v1395_v30 = vadd.f32 %v1394_v29, %v2712_v44  ;;  %v1482_v33 = vmax.f32 %v1391_v26, 0.0 }
 0x367   :  { %v1483_v32 = vmax.f32 %v1393_v28, 0.0 }
 0x368   :  { %v1484_v34 = vmax.f32 %v1395_v30, 0.0 }
 0x369   :  { %v1523_v35 = vpack.c.bf16 %v1483_v32, %v1481_v31  ;;  %v2781_v32 = vld [vmem:[%s2838_s8] ss:$0 sm:$0xff]  ;;  %s2402_s8 = smov [#allocation11]  }
 0x36a   :  { %v1524_v36 = vpack.c.bf16 %v1484_v34, %v1482_v33  ;;  %v1398_v37 = vpop.f32.mrb[112].mxu0  ;;  %s1866_s1 = sshll.u32 %s2402_s8, 4  ;;  %s1867_s1 = int_to_ptr.vmem [resolvable:$true] %s1866_s1 }
 0x36b   :  { %v1399_v38 = vadd.f32 %v1398_v37, %v2709_v58  ;;  %v1400_v39 = vpop.f32.mrb[113].mxu0  ;;  %s2362_s10 = scalar_lea.vmem %s1867_s1, 4096  ;;  %p2367_p13 = scmp.lt.s32.totalorder %s1867_s1, %s1867_s1 }
 0x36c   :  { %v1401_v0 = vadd.f32 %v1400_v39, %v2712_v44  ;;  %v1402_v42 = vpop.f32.mrb[114].mxu0  ;;  %1788 = vmatprep.mubr.bf16.mxu1 %v1524_v36  ;;  %p2363_p12 = scmp.ne.s32.totalorder %s1867_s1, %s2362_s10  ;;  %p2368_p0 = scmp.lt.s32.totalorder %s2362_s10, %s2362_s10 }
 0x36d   :  { %v1403_v43 = vadd.f32 %v1402_v42, %v2709_v58  ;;  %v1404_v46 = vpop.f32.mrb[115].mxu0  ;;  %1789 = vmatmul.mubr.bf16.gmra.mrb[100].mxu1 %v1523_v35  ;;  %v1485_v48 = vmax.f32 %v1399_v38, 0.0 }
 0x36e   :  { %v1405_v47 = vadd.f32 %v1404_v46, %v2712_v44  ;;  %v1486_v50 = vmax.f32 %v1401_v0, 0.0  ;;  %p2369_p1 = por %p2368_p0, %p2367_p13 }
 0x36f   :  { %v1487_v49 = vmax.f32 %v1403_v43, 0.0 }
 0x370   :  { %v1488_v51 = vmax.f32 %v1405_v47, 0.0  ;;  %p2370_p2 = pnand %p2369_p1, %p2363_p12 }
 0x371   :  { %v1525_v52 = vpack.c.bf16 %v1487_v49, %v1485_v48 }
 0x372   :  { %v1526_v53 = vpack.c.bf16 %v1488_v51, %v1486_v50  ;;  %v1408_v54 = vpop.f32.mrb[116].mxu0 }
 0x373   :  { %v1409_v55 = vadd.f32 %v1408_v54, %v2709_v58  ;;  %v1410_v56 = vpop.f32.mrb[117].mxu0 }
 0x374   :  { %v1411_v57 = vadd.f32 %v1410_v56, %v2712_v44  ;;  %v1412_v59 = vpop.f32.mrb[118].mxu0  ;;  %1796 = vmatprep.mubr.bf16.mxu1 %v1526_v53 }
 0x375   :  { %v1413_v45 = vadd.f32 %v1412_v59, %v2709_v58  ;;  %v1414_v60 = vpop.f32.mrb[119].mxu0  ;;  %1797 = vmatmul.mubr.bf16.gmra.mrb[104].mxu1 %v1525_v52  ;;  %v1489_v62 = vmax.f32 %v1409_v55, 0.0 }
 0x376   :  { %v1415_v61 = vadd.f32 %v1414_v60, %v2712_v44  ;;  %v1490_v1 = vmax.f32 %v1411_v57, 0.0 }
 0x377   :  { %v1491_v63 = vmax.f32 %v1413_v45, 0.0 }
 0x378   :  { %v1492_v2 = vmax.f32 %v1415_v61, 0.0 }
 0x379   :  { %v1527_v3 = vpack.c.bf16 %v1491_v63, %v1489_v62 }
 0x37a   :  { %v1528_v4 = vpack.c.bf16 %v1492_v2, %v1490_v1  ;;  %v1418_v5 = vpop.f32.mrb[120].mxu0 }
 0x37b   :  { %v1419_v40 = vadd.f32 %v1418_v5, %v2709_v58  ;;  %v1420_v6 = vpop.f32.mrb[121].mxu0 }
 0x37c   :  { %v1421_v7 = vadd.f32 %v1420_v6, %v2712_v44  ;;  %v1422_v41 = vpop.f32.mrb[122].mxu0  ;;  %1804 = vmatprep.mubr.bf16.mxu1 %v1528_v4 }
 0x37d   :  { %v1423_v8 = vadd.f32 %v1422_v41, %v2709_v58  ;;  %v1424_v9 = vpop.f32.mrb[123].mxu0  ;;  %1805 = vmatmul.mubr.bf16.gmra.mrb[108].mxu1 %v1527_v3  ;;  %v1493_v11 = vmax.f32 %v1419_v40, 0.0 }
 0x37e   :  { %v1425_v10 = vadd.f32 %v1424_v9, %v2712_v44  ;;  %v1494_v13 = vmax.f32 %v1421_v7, 0.0 }
 0x37f   :  { %v1495_v12 = vmax.f32 %v1423_v8, 0.0 }
 0x380   :  { %v1496_v14 = vmax.f32 %v1425_v10, 0.0 }
 0x381   :  { %v1529_v15 = vpack.c.bf16 %v1495_v12, %v1493_v11 }
 0x382   :  { %v1530_v16 = vpack.c.bf16 %v1496_v14, %v1494_v13  ;;  %v1428_v17 = vpop.f32.mrb[124].mxu0 }
 0x383   :  { %v1429_v18 = vadd.f32 %v1428_v17, %v2709_v58  ;;  %v1430_v19 = vpop.f32.mrb[125].mxu0 }
 0x384   :  { %v1431_v20 = vadd.f32 %v1430_v19, %v2712_v44  ;;  %v1432_v21 = vpop.f32.mrb[126].mxu0  ;;  %1812 = vmatprep.mubr.bf16.mxu1 %v1530_v16 }
 0x385   :  { %v1433_v22 = vadd.f32 %v1432_v21, %v2709_v58  ;;  %v1434_v23 = vpop.f32.mrb[127].mxu0  ;;  %1813 = vmatmul.mubr.bf16.gmra.mrb[112].mxu1 %v1529_v15  ;;  %v1497_v25 = vmax.f32 %v1429_v18, 0.0 }
 0x386   :  { %v1435_v24 = vadd.f32 %v1434_v23, %v2712_v44  ;;  %v1498_v27 = vmax.f32 %v1431_v20, 0.0 }
 0x387   :  { %v1499_v26 = vmax.f32 %v1433_v22, 0.0 }
 0x388   :  { %v1500_v28 = vmax.f32 %v1435_v24, 0.0 }
 0x389   :  { %v1531_v29 = vpack.c.bf16 %v1499_v26, %v1497_v25 }
 0x38a   :  { %v1532_v30 = vpack.c.bf16 %v1500_v28, %v1498_v27 }
 0x38c   :  { %1820 = vmatprep.mubr.bf16.mxu1 %v1532_v30 }
 0x38d   :  { %1821 = vmatmul.mubr.bf16.gmra.mrb[116].mxu1 %v1531_v29 }
 0x3e8   :  { %v1993_v31 = vpop.f32.mrb[128].mxu0 }
 0x3e9   :  { %v1994_v33 = vpop.f32.mrb[129].mxu0 }
 0x3ea   :  { %v1995_v58 = vadd.f32 %v1994_v33, %v1993_v31  ;;  %v1996_v34 = vpop.f32.mrb[130].mxu0 }
 0x3eb   :  { %v1997_v35 = vpop.f32.mrb[131].mxu0 }
 0x3ec   :  { %v1703_v44 = vadd.f32 %v1995_v58, %v2781_v32  ;;  %v1998_v36 = vadd.f32 %v1997_v35, %v1996_v34 }
 0x3ee   :  { %1829 = vst [vmem:[#allocation11] sm:$0xff] %v1703_v44  ;;  %v1706_v37 = vadd.f32 %v1998_v36, %v2781_v32 }
 0x3f0   :  { %1830 = vst [vmem:[#allocation11 + $0x8] sm:$0xff] %v1706_v37  ;;  %v1999_v38 = vpop.f32.mrb[132].mxu0 }
 0x3f1   :  { %v2000_v39 = vpop.f32.mrb[133].mxu0 }
 0x3f2   :  { %v2001_v0 = vadd.f32 %v2000_v39, %v1999_v38  ;;  %v2002_v42 = vpop.f32.mrb[134].mxu0 }
 0x3f3   :  { %v2003_v43 = vpop.f32.mrb[135].mxu0 }
 0x3f4   :  { %v1711_v46 = vadd.f32 %v2001_v0, %v2781_v32  ;;  %v2004_v47 = vadd.f32 %v2003_v43, %v2002_v42 }
 0x3f6   :  { %1831 = vst [vmem:[#allocation11 + $0x10] sm:$0xff] %v1711_v46  ;;  %v1714_v48 = vadd.f32 %v2004_v47, %v2781_v32 }
 0x3f8   :  { %1832 = vst [vmem:[#allocation11 + $0x18] sm:$0xff] %v1714_v48  ;;  %v2005_v49 = vpop.f32.mrb[64].mxu1 }
 0x3f9   :  { %v2006_v50 = vpop.f32.mrb[65].mxu1 }
 0x3fa   :  { %v2007_v51 = vadd.f32 %v2006_v50, %v2005_v49  ;;  %v2008_v52 = vpop.f32.mrb[66].mxu1 }
 0x3fb   :  { %v2009_v53 = vpop.f32.mrb[67].mxu1 }
 0x3fc   :  { %v1719_v54 = vadd.f32 %v2007_v51, %v2781_v32  ;;  %v2010_v55 = vadd.f32 %v2009_v53, %v2008_v52 }
 0x3fe   :  { %1833 = vst [vmem:[#allocation11 + $0x20] sm:$0xff] %v1719_v54  ;;  %v1722_v56 = vadd.f32 %v2010_v55, %v2781_v32 }
 0x400   :  { %1834 = vst [vmem:[#allocation11 + $0x28] sm:$0xff] %v1722_v56  ;;  %v2011_v57 = vpop.f32.mrb[68].mxu1 }
 0x401   :  { %v2012_v59 = vpop.f32.mrb[69].mxu1 }
 0x402   :  { %v2013_v45 = vadd.f32 %v2012_v59, %v2011_v57  ;;  %v2014_v60 = vpop.f32.mrb[70].mxu1 }
 0x403   :  { %v2015_v61 = vpop.f32.mrb[71].mxu1 }
 0x404   :  { %v1727_v62 = vadd.f32 %v2013_v45, %v2781_v32  ;;  %v2016_v63 = vadd.f32 %v2015_v61, %v2014_v60 }
 0x406   :  { %1835 = vst [vmem:[#allocation11 + $0x30] sm:$0xff] %v1727_v62  ;;  %v1730_v1 = vadd.f32 %v2016_v63, %v2781_v32 }
 0x408   :  { %1836 = vst [vmem:[#allocation11 + $0x38] sm:$0xff] %v1730_v1  ;;  %v2017_v2 = vpop.f32.mrb[72].mxu1 }
 0x409   :  { %v2018_v3 = vpop.f32.mrb[73].mxu1 }
 0x40a   :  { %v2019_v4 = vadd.f32 %v2018_v3, %v2017_v2  ;;  %v2020_v5 = vpop.f32.mrb[74].mxu1 }
 0x40b   :  { %v2021_v40 = vpop.f32.mrb[75].mxu1 }
 0x40c   :  { %v1735_v6 = vadd.f32 %v2019_v4, %v2781_v32  ;;  %v2022_v7 = vadd.f32 %v2021_v40, %v2020_v5 }
 0x40e   :  { %1837 = vst [vmem:[#allocation11 + $0x40] sm:$0xff] %v1735_v6  ;;  %v1738_v41 = vadd.f32 %v2022_v7, %v2781_v32 }
 0x410   :  { %1838 = vst [vmem:[#allocation11 + $0x48] sm:$0xff] %v1738_v41  ;;  %v2023_v8 = vpop.f32.mrb[76].mxu1 }
 0x411   :  { %v2024_v9 = vpop.f32.mrb[77].mxu1 }
 0x412   :  { %v2025_v10 = vadd.f32 %v2024_v9, %v2023_v8  ;;  %v2026_v11 = vpop.f32.mrb[78].mxu1 }
 0x413   :  { %v2027_v12 = vpop.f32.mrb[79].mxu1 }
 0x414   :  { %v1743_v13 = vadd.f32 %v2025_v10, %v2781_v32  ;;  %v2028_v14 = vadd.f32 %v2027_v12, %v2026_v11 }
 0x416   :  { %1839 = vst [vmem:[#allocation11 + $0x50] sm:$0xff] %v1743_v13  ;;  %v1746_v15 = vadd.f32 %v2028_v14, %v2781_v32 }
 0x418   :  { %1840 = vst [vmem:[#allocation11 + $0x58] sm:$0xff] %v1746_v15  ;;  %v2029_v16 = vpop.f32.mrb[80].mxu1 }
 0x419   :  { %v2030_v17 = vpop.f32.mrb[81].mxu1 }
 0x41a   :  { %v2031_v18 = vadd.f32 %v2030_v17, %v2029_v16  ;;  %v2032_v19 = vpop.f32.mrb[82].mxu1 }
 0x41b   :  { %v2033_v20 = vpop.f32.mrb[83].mxu1 }
 0x41c   :  { %v1751_v21 = vadd.f32 %v2031_v18, %v2781_v32  ;;  %v2034_v22 = vadd.f32 %v2033_v20, %v2032_v19 }
 0x41e   :  { %1841 = vst [vmem:[#allocation11 + $0x60] sm:$0xff] %v1751_v21  ;;  %v1754_v23 = vadd.f32 %v2034_v22, %v2781_v32 }
 0x420   :  { %1842 = vst [vmem:[#allocation11 + $0x68] sm:$0xff] %v1754_v23  ;;  %v2035_v24 = vpop.f32.mrb[84].mxu1 }
 0x421   :  { %v2036_v25 = vpop.f32.mrb[85].mxu1 }
 0x422   :  { %v2037_v26 = vadd.f32 %v2036_v25, %v2035_v24  ;;  %v2038_v27 = vpop.f32.mrb[86].mxu1 }
 0x423   :  { %v2039_v28 = vpop.f32.mrb[87].mxu1 }
 0x424   :  { %v1759_v29 = vadd.f32 %v2037_v26, %v2781_v32  ;;  %v2040_v30 = vadd.f32 %v2039_v28, %v2038_v27 }
 0x426   :  { %1843 = vst [vmem:[#allocation11 + $0x70] sm:$0xff] %v1759_v29  ;;  %v1762_v31 = vadd.f32 %v2040_v30, %v2781_v32 }
 0x428   :  { %1844 = vst [vmem:[#allocation11 + $0x78] sm:$0xff] %v1762_v31  ;;  %v2041_v33 = vpop.f32.mrb[88].mxu1 }
 0x429   :  { %v2042_v58 = vpop.f32.mrb[89].mxu1 }
 0x42a   :  { %v2043_v34 = vadd.f32 %v2042_v58, %v2041_v33  ;;  %v2044_v35 = vpop.f32.mrb[90].mxu1 }
 0x42b   :  { %v2045_v44 = vpop.f32.mrb[91].mxu1 }
 0x42c   :  { %v1767_v36 = vadd.f32 %v2043_v34, %v2781_v32  ;;  %v2046_v37 = vadd.f32 %v2045_v44, %v2044_v35 }
 0x42e   :  { %1845 = vst [vmem:[#allocation11 + $0x80] sm:$0xff] %v1767_v36  ;;  %v1770_v38 = vadd.f32 %v2046_v37, %v2781_v32 }
 0x430   :  { %1846 = vst [vmem:[#allocation11 + $0x88] sm:$0xff] %v1770_v38  ;;  %v2047_v39 = vpop.f32.mrb[92].mxu1 }
 0x431   :  { %v2048_v0 = vpop.f32.mrb[93].mxu1 }
 0x432   :  { %v2049_v42 = vadd.f32 %v2048_v0, %v2047_v39  ;;  %v2050_v43 = vpop.f32.mrb[94].mxu1 }
 0x433   :  { %v2051_v46 = vpop.f32.mrb[95].mxu1 }
 0x434   :  { %v1775_v47 = vadd.f32 %v2049_v42, %v2781_v32  ;;  %v2052_v48 = vadd.f32 %v2051_v46, %v2050_v43 }
 0x436   :  { %1847 = vst [vmem:[#allocation11 + $0x90] sm:$0xff] %v1775_v47  ;;  %v1778_v49 = vadd.f32 %v2052_v48, %v2781_v32 }
 0x438   :  { %1848 = vst [vmem:[#allocation11 + $0x98] sm:$0xff] %v1778_v49  ;;  %v2053_v50 = vpop.f32.mrb[96].mxu1 }
 0x439   :  { %v2054_v51 = vpop.f32.mrb[97].mxu1 }
 0x43a   :  { %v2055_v52 = vadd.f32 %v2054_v51, %v2053_v50  ;;  %v2056_v53 = vpop.f32.mrb[98].mxu1 }
 0x43b   :  { %v2057_v54 = vpop.f32.mrb[99].mxu1 }
 0x43c   :  { %v1783_v55 = vadd.f32 %v2055_v52, %v2781_v32  ;;  %v2058_v56 = vadd.f32 %v2057_v54, %v2056_v53 }
 0x43e   :  { %1849 = vst [vmem:[#allocation11 + $0xa0] sm:$0xff] %v1783_v55  ;;  %v1786_v57 = vadd.f32 %v2058_v56, %v2781_v32 }
 0x440   :  { %1850 = vst [vmem:[#allocation11 + $0xa8] sm:$0xff] %v1786_v57  ;;  %v2059_v59 = vpop.f32.mrb[100].mxu1 }
 0x441   :  { %v2060_v45 = vpop.f32.mrb[101].mxu1 }
 0x442   :  { %v2061_v60 = vadd.f32 %v2060_v45, %v2059_v59  ;;  %v2062_v61 = vpop.f32.mrb[102].mxu1 }
 0x443   :  { %v2063_v62 = vpop.f32.mrb[103].mxu1 }
 0x444   :  { %v1791_v63 = vadd.f32 %v2061_v60, %v2781_v32  ;;  %v2064_v1 = vadd.f32 %v2063_v62, %v2062_v61 }
 0x446   :  { %1851 = vst [vmem:[#allocation11 + $0xb0] sm:$0xff] %v1791_v63  ;;  %v1794_v2 = vadd.f32 %v2064_v1, %v2781_v32 }
 0x448   :  { %1852 = vst [vmem:[#allocation11 + $0xb8] sm:$0xff] %v1794_v2  ;;  %v2065_v3 = vpop.f32.mrb[104].mxu1 }
 0x449   :  { %v2066_v4 = vpop.f32.mrb[105].mxu1 }
 0x44a   :  { %v2067_v5 = vadd.f32 %v2066_v4, %v2065_v3  ;;  %v2068_v40 = vpop.f32.mrb[106].mxu1 }
 0x44b   :  { %v2069_v6 = vpop.f32.mrb[107].mxu1 }
 0x44c   :  { %v1799_v7 = vadd.f32 %v2067_v5, %v2781_v32  ;;  %v2070_v41 = vadd.f32 %v2069_v6, %v2068_v40 }
 0x44e   :  { %1853 = vst [vmem:[#allocation11 + $0xc0] sm:$0xff] %v1799_v7  ;;  %v1802_v8 = vadd.f32 %v2070_v41, %v2781_v32 }
 0x450   :  { %1854 = vst [vmem:[#allocation11 + $0xc8] sm:$0xff] %v1802_v8  ;;  %v2071_v9 = vpop.f32.mrb[108].mxu1 }
 0x451   :  { %v2072_v10 = vpop.f32.mrb[109].mxu1 }
 0x452   :  { %v2073_v11 = vadd.f32 %v2072_v10, %v2071_v9  ;;  %v2074_v12 = vpop.f32.mrb[110].mxu1 }
 0x453   :  { %v2075_v13 = vpop.f32.mrb[111].mxu1 }
 0x454   :  { %v1807_v14 = vadd.f32 %v2073_v11, %v2781_v32  ;;  %v2076_v15 = vadd.f32 %v2075_v13, %v2074_v12 }
 0x456   :  { %1855 = vst [vmem:[#allocation11 + $0xd0] sm:$0xff] %v1807_v14  ;;  %v1810_v16 = vadd.f32 %v2076_v15, %v2781_v32 }
 0x458   :  { %1856 = vst [vmem:[#allocation11 + $0xd8] sm:$0xff] %v1810_v16  ;;  %v2077_v17 = vpop.f32.mrb[112].mxu1 }
 0x459   :  { %v2078_v18 = vpop.f32.mrb[113].mxu1 }
 0x45a   :  { %v2079_v19 = vadd.f32 %v2078_v18, %v2077_v17  ;;  %v2080_v20 = vpop.f32.mrb[114].mxu1 }
 0x45b   :  { %v2081_v21 = vpop.f32.mrb[115].mxu1 }
 0x45c   :  { %v1815_v22 = vadd.f32 %v2079_v19, %v2781_v32  ;;  %v2082_v23 = vadd.f32 %v2081_v21, %v2080_v20 }
 0x45e   :  { %1857 = vst [vmem:[#allocation11 + $0xe0] sm:$0xff] %v1815_v22  ;;  %v1818_v24 = vadd.f32 %v2082_v23, %v2781_v32 }
 0x460   :  { %1858 = vst [vmem:[#allocation11 + $0xe8] sm:$0xff] %v1818_v24  ;;  %v2083_v25 = vpop.f32.mrb[116].mxu1 }
 0x461   :  { %v2084_v26 = vpop.f32.mrb[117].mxu1 }
 0x462   :  { %v2085_v27 = vadd.f32 %v2084_v26, %v2083_v25  ;;  %v2086_v28 = vpop.f32.mrb[118].mxu1 }
 0x463   :  { %v2087_v29 = vpop.f32.mrb[119].mxu1 }
 0x464   :  { %v1823_v30 = vadd.f32 %v2085_v27, %v2781_v32  ;;  %v2088_v31 = vadd.f32 %v2087_v29, %v2086_v28 }
 0x466   :  { %1859 = vst [vmem:[#allocation11 + $0xf0] sm:$0xff] %v1823_v30  ;;  %v1826_v33 = vadd.f32 %v2088_v31, %v2781_v32 }
 0x468   :  { %1860 = vst [vmem:[#allocation11 + $0xf8] sm:$0xff] %v1826_v33 }
 0x469   :  { %2373 = shalt.err (!%p2370_p2)
}
 0x46a   :  { %s2374_s15 = scalar_lea.hbm %s2839_s9, 4096 }
 0x46b   :  { %p2375_p3 = scmp.ne.s32.totalorder %s2839_s9, %s2374_s15  ;;  %p2378_p4 = scmp.lt.u32.totalorder %s2374_s15, %s2839_s9 }
 0x46d   :  { %p2380_p5 = pnand %p2378_p4, %p2375_p3 }
 0x46f   :  { %2383 = shalt.err (!%p2380_p5)
}
 0x470   :  { %1872 = dma.vmem_to_hbm [thread:$0]  %s1867_s1, 4096, %s2839_s9, [#allocation4], %s2394_s21, %s2394_s21, %s2395_s22  }
 0x471   :  { %2390 = dma.done.wait [#allocation4], 4096  }
 0x472   :  { %2391 = vsyncadd [#allocation4], 4294963200 }
 0x473   :  { %1876 = vsyncpa [#allocation3], 1 }
 0x474   :  { %1877 = vsyncpa [#allocation6], 1 }
 0x475   :  { %1878 = vsyncpa [#allocation9], 1 }
 0x476   :  { %1879 = vsyncpa [#allocation4], 1 }

</bundles_post_ra>
